<compile_context>
chip_gen: v6e
topology: v6e:2x2x1
jax: 0.10.0
libtpu: 0.0.40
codegen_flags: <defaults>
</compile_context>

<pallas_src>
import numpy as np
import jax
import jax.numpy as jnp
from jax import lax
from jax.experimental import pallas as pl
from jax.experimental.pallas import tpu as pltpu

# MXU operand dtype.  bf16 is MXU-native on v5e / v6e / v7x (f32 matmuls cost multiple passes);
# accumulation stays f32 via preferred_element_type.  Flip to jnp.float32 for bit-accurate
# comparison against the f32 reference (the test tolerance adapts automatically).
MXU_DTYPE = jnp.bfloat16


def _ceil8(n):
    return -(-n // 8) * 8


def _pool_conv_gather(h, w, rows_in):
    """Per-SAMPLE 0/1 gather folding the 3x3 SAME tap shift + 2x2 pool-offset selection.

    Returns (g, rp) with g of shape (9 * 4 * rp, rows_in), rp = ceil8((h//2)*(w//2)).  Tap block
    t, pool-offset block o = (ph, pw), row r = i*(w//2)+j selects input row (2i+ph+di, 2j+pw+dj)
    (flat index hh*w+ww); zero where out of bounds.  Each row has at most one nonzero, so the
    gather matmul is an exact selection even in bf16.  Columns >= h*w stay zero, which keeps the
    padded rows of the previous stage (relu(bias) garbage) out of the valid outputs.
    """
    ho, wo = h // 2, w // 2
    rp = _ceil8(ho * wo)
    g = np.zeros((9, 4 * rp, rows_in), np.float32)
    taps = [(di, dj) for di in (-1, 0, 1) for dj in (-1, 0, 1)]
    offs = [(ph, pw) for ph in (0, 1) for pw in (0, 1)]
    for t, (di, dj) in enumerate(taps):
        for o, (ph, pw) in enumerate(offs):
            for i in range(ho):
                for j in range(wo):
                    hh, ww = 2 * i + ph + di, 2 * j + pw + dj
                    if 0 <= hh < h and 0 <= ww < w:
                        g[t, o * rp + i * wo + j, hh * w + ww] = 1.0
    return g.reshape(9 * 4 * rp, rows_in), rp


def _const_spec(a):
    """Full-array block with a constant index_map: DMA'd once, VMEM-resident across grid steps."""
    nd = a.ndim
    return pl.BlockSpec(a.shape, lambda b, _nd=nd: (0,) * _nd)


# ----------------------------- fused forward (one pallas_call, grid over batch) ----------------

def polygon_model_forward(image, polygon, params):
    """image: (B, 8, 8, 3) NHWC float; polygon: (B, 64, 4) float -> (B, 1) logits."""
    B, H, W, Cin = image.shape
    assert (H, W, Cin) == (8, 8, 3)
    P = polygon.shape[1]
    assert P == 64 and polygon.shape[2] == 4      # 64 poly features + 64 conv features = 128

    # Compile-time per-sample gather constants (derived from shapes only).
    g1_np, rp1 = _pool_conv_gather(8, 8, 64)      # 8x8 -> 4x4   (rp1 = 16, all rows real)
    g2_np, rp2 = _pool_conv_gather(4, 4, rp1)     # 4x4 -> 2x2   (rp2 = 8, rows 4..7 padding)
    g3_np, rp3 = _pool_conv_gather(2, 2, rp2)     # 2x2 -> 1x1   (rp3 = 8, rows 1..7 padding)

    f32 = jnp.float32
    # Layout plumbing + one-time MXU-dtype casts (all matmul operands cast here, not per tap).
    x0 = image.astype(f32).reshape(B, H * W, Cin).astype(MXU_DTYPE)            # (B, 64, 3)
    poly_t = jnp.transpose(polygon.astype(f32), (0, 2, 1)).astype(MXU_DTYPE)   # (B, 4, 64)

    g1 = jnp.asarray(g1_np, dtype=MXU_DTYPE)
    g2 = jnp.asarray(g2_np, dtype=MXU_DTYPE)
    g3 = jnp.asarray(g3_np, dtype=MXU_DTYPE)
    w1 = params["conv1_w"].reshape(9, 3, 16).astype(MXU_DTYPE)
    w2 = params["conv2_w"].reshape(9, 16, 32).astype(MXU_DTYPE)
    w3 = params["conv3_w"].reshape(9, 32, 64).astype(MXU_DTYPE)
    b1 = params["conv1_b"].reshape(1, 16).astype(f32)
    b2 = params["conv2_b"].reshape(1, 32).astype(f32)
    b3 = params["conv3_b"].reshape(1, 64).astype(f32)
    wp = params["fc_poly_w"].reshape(1, 4).astype(MXU_DTYPE)    # fc_polygon as (1,4)x(4,64) dot
    bp = params["fc_poly_b"].reshape(1, 1).astype(f32)
    wc_img = params["fc_comb_w"][:64, :].astype(MXU_DTYPE)      # image half of fc_combined
    wc_poly = params["fc_comb_w"][64:, :].astype(MXU_DTYPE)     # polygon half (replaces concat)
    bc = params["fc_comb_b"].reshape(1, 128).astype(f32)
    w_out = params["fc_out_w"].astype(MXU_DTYPE)                # (128, 1)
    b_out = params["fc_out_b"].reshape(1, 1).astype(f32)

    def kernel(x0_ref, poly_ref, g1_ref, w1_ref, b1_ref, g2_ref, w2_ref, b2_ref,
               g3_ref, w3_ref, b3_ref, wp_ref, bp_ref, wci_ref, wcp_ref, bc_ref,
               wo_ref, bo_ref, out_ref):

        def conv_relu_pool(x, g_ref, w_ref, b_ref, rp):
            # x: (rows_in, Cin) MXU_DTYPE; g_ref: (9*4*rp, rows_in); w_ref: (9, Cin, Cout).
            R = 4 * rp
            # ONE tall gather matmul for all 9 taps (exact 0/1 selection, so f32->bf16 is exact).
            gathered = jnp.dot(g_ref[...], x,
                               preferred_element_type=jnp.float32).astype(x.dtype)
            # 9 per-tap weight matmuls on 8-aligned row blocks, accumulated in f32.
            pre = jnp.dot(gathered[0:R], w_ref[0], preferred_element_type=jnp.float32)
            for t in range(1, 9):
                pre = pre + jnp.dot(gathered[t * R:(t + 1) * R], w_ref[t],
                                    preferred_element_type=jnp.float32)
            z = jnp.maximum(pre + b_ref[...], 0.0)          # bias + ReLU once per stage
            # 2x2 max-pool = elementwise max over the 4 pool-offset row blocks (8-aligned).
            return jnp.maximum(jnp.maximum(z[:rp], z[rp:2 * rp]),
                               jnp.maximum(z[2 * rp:3 * rp], z[3 * rp:4 * rp]))

        x = x0_ref[0]                                                          # (64, 3)
        x = conv_relu_pool(x, g1_ref, w1_ref, b1_ref, rp1).astype(MXU_DTYPE)   # (16, 16)
        x = conv_relu_pool(x, g2_ref, w2_ref, b2_ref, rp2).astype(MXU_DTYPE)   # (8, 32)
        x = conv_relu_pool(x, g3_ref, w3_ref, b3_ref, rp3)                     # (8, 64) f32, row 0 real

        # fc_polygon: one (1,4)x(4,64) dot, lane-dense (1, 64) output, then ReLU.
        pf = jnp.maximum(jnp.dot(wp_ref[...], poly_ref[0],
                                 preferred_element_type=jnp.float32) + bp_ref[...], 0.0)

        # fc_combined with split weights (== concat([x_img, pf]) @ W) + ReLU, then fc_output.
        # Padded rows 1..7 ride along on full (8,128) tiles; only row 0 is ever read back.
        h = (jnp.dot(x.astype(MXU_DTYPE), wci_ref[...], preferred_element_type=jnp.float32)
             + jnp.dot(pf.astype(MXU_DTYPE), wcp_ref[...], preferred_element_type=jnp.float32)
             + bc_ref[...])
        h = jnp.maximum(h, 0.0)                                                # (8, 128)
        y = jnp.dot(h.astype(MXU_DTYPE), wo_ref[...],
                    preferred_element_type=jnp.float32) + bo_ref[...]          # (8, 1)
        out_ref[0] = y.astype(out_ref.dtype)

    operands = (x0, poly_t, g1, w1, b1, g2, w2, b2, g3, w3, b3, wp, bp,
                wc_img, wc_poly, bc, w_out, b_out)

    # Advisory cost estimate for XLA's scheduler (whole grid).
    flops_per_sample = 0
    for rp, rows_in, ci, co in ((rp1, 64, 3, 16), (rp2, rp1, 16, 32), (rp3, rp2, 32, 64)):
        flops_per_sample += 2 * 9 * 4 * rp * rows_in * ci        # tall gather matmul
        flops_per_sample += 2 * 9 * 4 * rp * ci * co             # per-tap weight matmuls
    flops_per_sample += 2 * 4 * 64 + 2 * 8 * 64 * 128 + 2 * 64 * 128 + 2 * 8 * 128
    flops = B * flops_per_sample

    const_bytes = sum(int(np.prod(a.shape)) * a.dtype.itemsize for a in operands[2:])
    per_step_bytes = (int(np.prod(x0.shape[1:])) * x0.dtype.itemsize
                      + int(np.prod(poly_t.shape[1:])) * poly_t.dtype.itemsize + 8 * 4)
    bytes_accessed = const_bytes + B * per_step_bytes

    # Explicit scoped-VMEM budget sized from the real footprint (resident constants +
    # double-buffered per-sample blocks) with headroom, instead of the 16/32 MiB defaults.
    vmem_limit = int(min(64 << 20, max(8 << 20, 2 * (const_bytes + per_step_bytes) + (4 << 20))))

    out = pl.pallas_call(
        kernel,
        out_shape=jax.ShapeDtypeStruct((B, 8, 1), jnp.float32),
        grid=(B,),
        in_specs=[pl.BlockSpec((1, H * W, Cin), lambda b: (b, 0, 0)),     # per-sample image rows
                  pl.BlockSpec((1, 4, P), lambda b: (b, 0, 0))]           # per-sample polygon
                 + [_const_spec(a) for a in operands[2:]],
        out_specs=pl.BlockSpec((1, 8, 1), lambda b: (b, 0, 0)),
        compiler_params=pltpu.CompilerParams(
            dimension_semantics=("parallel",),       # megacore-shard the batch on v7x
            vmem_limit_bytes=vmem_limit),
        cost_estimate=pl.CostEstimate(flops=flops, transcendentals=0,
                                      bytes_accessed=bytes_accessed),
    )(*operands)
    return out[:, 0, :]                                                   # (B, 1): real row only


# ----------------------------- deterministic params + pure-JAX reference -----------------------

def init_params(key):
    ks = jax.random.split(key, 12)

    def u(k, shape, fan_in):
        bound = 1.0 / jnp.sqrt(jnp.float32(fan_in))
        return jax.random.uniform(k, shape, jnp.float32, -bound, bound)

    return {
        "conv1_w": u(ks[0], (3, 3, 3, 16), 3 * 9),
        "conv1_b": u(ks[1], (16,), 3 * 9),
        "conv2_w": u(ks[2], (3, 3, 16, 32), 16 * 9),
        "conv2_b": u(ks[3], (32,), 16 * 9),
        "conv3_w": u(ks[4], (3, 3, 32, 64), 32 * 9),
        "conv3_b": u(ks[5], (64,), 32 * 9),
        "fc_poly_w": u(ks[6], (4, 1), 4),
        "fc_poly_b": u(ks[7], (1,), 4),
        "fc_comb_w": u(ks[8], (128, 128), 128),
        "fc_comb_b": u(ks[9], (128,), 128),
        "fc_out_w": u(ks[10], (128, 1), 128),
        "fc_out_b": u(ks[11], (1,), 128),
    }


def ref_forward(image, polygon, p):
    x = image.astype(jnp.float32)
    for i in (1, 2, 3):
        w, b = p[f"conv{i}_w"], p[f"conv{i}_b"]
        x = lax.conv_general_dilated(x, w, window_strides=(1, 1), padding="SAME",
                                     dimension_numbers=("NHWC", "HWIO", "NHWC"))
        x = jax.nn.relu(x + b)
        x = lax.reduce_window(x, -jnp.inf, lax.max, (1, 2, 2, 1), (1, 2, 2, 1), "VALID")
    B = x.shape[0]
    x_flat = x.reshape(B, -1)
    # TODO(synk): torch.cat((x, polygon), dim=1) in the original module is shape-inconsistent as
    # written (fc_combined expects 64+64 features while fc_polygon emits one per polygon row); as
    # before we take the 64 per-row Linear(4,1)+ReLU outputs as the 64-wide polygon feature block.
    pf = jax.nn.relu(polygon.astype(jnp.float32) @ p["fc_poly_w"] + p["fc_poly_b"])[..., 0]
    comb = jnp.concatenate([x_flat, pf], axis=1)
    h = jax.nn.relu(comb @ p["fc_comb_w"] + p["fc_comb_b"])
    return h @ p["fc_out_w"] + p["fc_out_b"]


# ----------------------------- main -------------------------------------------------------------

if __name__ == "__main__":
    key = jax.random.PRNGKey(0)
    k_params, k_img, k_poly = jax.random.split(key, 3)
    params = init_params(k_params)

    # Shapes consistent with the module: 8x8 image -> 64 conv features,
    # 64 polygon rows of 4 coords -> 64 polygon features, cat -> 128 = fc_combined input.
    image = jax.random.uniform(k_img, (2, 8, 8, 3), jnp.float32)      # NHWC
    polygon = jax.random.uniform(k_poly, (2, 64, 4), jnp.float32)

    out = polygon_model_forward(image, polygon, params)
    out = jax.block_until_ready(out)

    ref = ref_forward(image, polygon, params)
    assert out.shape == (2, 1), out.shape
    # bf16 MXU operands (f32 accumulation) vs the pure-f32 reference: allow bf16 rounding error.
    tol = 1e-4 if MXU_DTYPE == jnp.float32 else 2e-2
    assert jnp.allclose(out, ref, atol=tol, rtol=tol), (out, ref)

    print("KERNEL_OK")
</pallas_src>

<mosaic_0001>
module attributes {stable_mosaic.version = 11 : i64} {
  func.func @kernel(%arg0: i32, %arg1: memref<1x64x3xbf16, #tpu.memory_space<vmem>>, %arg2: memref<1x4x64xbf16, #tpu.memory_space<vmem>>, %arg3: memref<576x64xbf16, #tpu.memory_space<vmem>>, %arg4: memref<9x3x16xbf16, #tpu.memory_space<vmem>>, %arg5: memref<1x16xf32, #tpu.memory_space<vmem>>, %arg6: memref<288x16xbf16, #tpu.memory_space<vmem>>, %arg7: memref<9x16x32xbf16, #tpu.memory_space<vmem>>, %arg8: memref<1x32xf32, #tpu.memory_space<vmem>>, %arg9: memref<288x8xbf16, #tpu.memory_space<vmem>>, %arg10: memref<9x32x64xbf16, #tpu.memory_space<vmem>>, %arg11: memref<1x64xf32, #tpu.memory_space<vmem>>, %arg12: memref<1x4xbf16, #tpu.memory_space<vmem>>, %arg13: memref<1x1xf32, #tpu.memory_space<vmem>>, %arg14: memref<64x128xbf16, #tpu.memory_space<vmem>>, %arg15: memref<64x128xbf16, #tpu.memory_space<vmem>>, %arg16: memref<1x128xf32, #tpu.memory_space<vmem>>, %arg17: memref<128x1xbf16, #tpu.memory_space<vmem>>, %arg18: memref<1x1xf32, #tpu.memory_space<vmem>>, %arg19: memref<1x8x1xf32, #tpu.memory_space<vmem>>) attributes {dimension_semantics = [#tpu.dimension_semantics<parallel>], iteration_bounds = array<i64: 2>, scalar_prefetch = 0 : i64, scratch_operands = 0 : i64, tpu.core_type = #tpu.core_type<tc>, window_params = [{transform_indices = @transform_0, window_bounds = array<i64: 1, 64, 3>}, {transform_indices = @transform_1, window_bounds = array<i64: 1, 4, 64>}, {pipeline_mode = #tpu.pipeline_mode<synchronous>, transform_indices = @transform_2, window_bounds = array<i64: 576, 64>}, {pipeline_mode = #tpu.pipeline_mode<synchronous>, transform_indices = @transform_3, window_bounds = array<i64: 9, 3, 16>}, {pipeline_mode = #tpu.pipeline_mode<synchronous>, transform_indices = @transform_4, window_bounds = array<i64: 1, 16>}, {pipeline_mode = #tpu.pipeline_mode<synchronous>, transform_indices = @transform_5, window_bounds = array<i64: 288, 16>}, {pipeline_mode = #tpu.pipeline_mode<synchronous>, transform_indices = @transform_6, window_bounds = array<i64: 9, 16, 32>}, {pipeline_mode = #tpu.pipeline_mode<synchronous>, transform_indices = @transform_7, window_bounds = array<i64: 1, 32>}, {pipeline_mode = #tpu.pipeline_mode<synchronous>, transform_indices = @transform_8, window_bounds = array<i64: 288, 8>}, {pipeline_mode = #tpu.pipeline_mode<synchronous>, transform_indices = @transform_9, window_bounds = array<i64: 9, 32, 64>}, {pipeline_mode = #tpu.pipeline_mode<synchronous>, transform_indices = @transform_10, window_bounds = array<i64: 1, 64>}, {pipeline_mode = #tpu.pipeline_mode<synchronous>, transform_indices = @transform_11, window_bounds = array<i64: 1, 4>}, {pipeline_mode = #tpu.pipeline_mode<synchronous>, transform_indices = @transform_12, window_bounds = array<i64: 1, 1>}, {pipeline_mode = #tpu.pipeline_mode<synchronous>, transform_indices = @transform_13, window_bounds = array<i64: 64, 128>}, {pipeline_mode = #tpu.pipeline_mode<synchronous>, transform_indices = @transform_14, window_bounds = array<i64: 64, 128>}, {pipeline_mode = #tpu.pipeline_mode<synchronous>, transform_indices = @transform_15, window_bounds = array<i64: 1, 128>}, {pipeline_mode = #tpu.pipeline_mode<synchronous>, transform_indices = @transform_16, window_bounds = array<i64: 128, 1>}, {pipeline_mode = #tpu.pipeline_mode<synchronous>, transform_indices = @transform_17, window_bounds = array<i64: 1, 1>}, {transform_indices = @transform_18, window_bounds = array<i64: 1, 8, 1>}]} {
    %c0 = arith.constant 0 : index
    %c0_0 = arith.constant 0 : index
    %c0_1 = arith.constant 0 : index
    %0 = vector.load %arg1[%c0, %c0_0, %c0_1] : memref<1x64x3xbf16, #tpu.memory_space<vmem>>, vector<1x64x3xbf16>
    %1 = vector.shape_cast %0 : vector<1x64x3xbf16> to vector<64x3xbf16>
    %c0_2 = arith.constant 0 : index
    %c0_3 = arith.constant 0 : index
    %2 = vector.load %arg3[%c0_2, %c0_3] : memref<576x64xbf16, #tpu.memory_space<vmem>>, vector<576x64xbf16>
    %cst = arith.constant dense<0.000000e+00> : vector<576x3xf32>
    %3 = tpu.matmul %2, %1, %cst {dimension_numbers = #tpu.dot_dimension_numbers<[1], [0], [0], [1], [0, 0, 1, 1], [], []>} : vector<576x64xbf16>, vector<64x3xbf16>, vector<576x3xf32> -> vector<576x3xf32>
    %4 = arith.truncf %3 : vector<576x3xf32> to vector<576x3xbf16>
    %5 = vector.extract_strided_slice %4 {offsets = [0, 0], sizes = [64, 3], strides = [1, 1]} : vector<576x3xbf16> to vector<64x3xbf16>
    %c0_4 = arith.constant 0 : index
    %c0_5 = arith.constant 0 : index
    %c0_6 = arith.constant 0 : index
    %6 = vector.load %arg4[%c0_4, %c0_5, %c0_6] : memref<9x3x16xbf16, #tpu.memory_space<vmem>>, vector<1x3x16xbf16>
    %7 = vector.shape_cast %6 : vector<1x3x16xbf16> to vector<3x16xbf16>
    %cst_7 = arith.constant dense<0.000000e+00> : vector<64x16xf32>
    %8 = tpu.matmul %5, %7, %cst_7 {dimension_numbers = #tpu.dot_dimension_numbers<[1], [0], [0], [1], [0, 0, 1, 1], [], []>} : vector<64x3xbf16>, vector<3x16xbf16>, vector<64x16xf32> -> vector<64x16xf32>
    %9 = vector.extract_strided_slice %4 {offsets = [64, 0], sizes = [64, 3], strides = [1, 1]} : vector<576x3xbf16> to vector<64x3xbf16>
    %c1 = arith.constant 1 : index
    %c0_8 = arith.constant 0 : index
    %c0_9 = arith.constant 0 : index
    %10 = vector.load %arg4[%c1, %c0_8, %c0_9] : memref<9x3x16xbf16, #tpu.memory_space<vmem>>, vector<1x3x16xbf16>
    %11 = vector.shape_cast %10 : vector<1x3x16xbf16> to vector<3x16xbf16>
    %cst_10 = arith.constant dense<0.000000e+00> : vector<64x16xf32>
    %12 = tpu.matmul %9, %11, %cst_10 {dimension_numbers = #tpu.dot_dimension_numbers<[1], [0], [0], [1], [0, 0, 1, 1], [], []>} : vector<64x3xbf16>, vector<3x16xbf16>, vector<64x16xf32> -> vector<64x16xf32>
    %13 = arith.addf %8, %12 : vector<64x16xf32>
    %14 = vector.extract_strided_slice %4 {offsets = [128, 0], sizes = [64, 3], strides = [1, 1]} : vector<576x3xbf16> to vector<64x3xbf16>
    %c2 = arith.constant 2 : index
    %c0_11 = arith.constant 0 : index
    %c0_12 = arith.constant 0 : index
    %15 = vector.load %arg4[%c2, %c0_11, %c0_12] : memref<9x3x16xbf16, #tpu.memory_space<vmem>>, vector<1x3x16xbf16>
    %16 = vector.shape_cast %15 : vector<1x3x16xbf16> to vector<3x16xbf16>
    %cst_13 = arith.constant dense<0.000000e+00> : vector<64x16xf32>
    %17 = tpu.matmul %14, %16, %cst_13 {dimension_numbers = #tpu.dot_dimension_numbers<[1], [0], [0], [1], [0, 0, 1, 1], [], []>} : vector<64x3xbf16>, vector<3x16xbf16>, vector<64x16xf32> -> vector<64x16xf32>
    %18 = arith.addf %13, %17 : vector<64x16xf32>
    %19 = vector.extract_strided_slice %4 {offsets = [192, 0], sizes = [64, 3], strides = [1, 1]} : vector<576x3xbf16> to vector<64x3xbf16>
    %c3 = arith.constant 3 : index
    %c0_14 = arith.constant 0 : index
    %c0_15 = arith.constant 0 : index
    %20 = vector.load %arg4[%c3, %c0_14, %c0_15] : memref<9x3x16xbf16, #tpu.memory_space<vmem>>, vector<1x3x16xbf16>
    %21 = vector.shape_cast %20 : vector<1x3x16xbf16> to vector<3x16xbf16>
    %cst_16 = arith.constant dense<0.000000e+00> : vector<64x16xf32>
    %22 = tpu.matmul %19, %21, %cst_16 {dimension_numbers = #tpu.dot_dimension_numbers<[1], [0], [0], [1], [0, 0, 1, 1], [], []>} : vector<64x3xbf16>, vector<3x16xbf16>, vector<64x16xf32> -> vector<64x16xf32>
    %23 = arith.addf %18, %22 : vector<64x16xf32>
    %24 = vector.extract_strided_slice %4 {offsets = [256, 0], sizes = [64, 3], strides = [1, 1]} : vector<576x3xbf16> to vector<64x3xbf16>
    %c4 = arith.constant 4 : index
    %c0_17 = arith.constant 0 : index
    %c0_18 = arith.constant 0 : index
    %25 = vector.load %arg4[%c4, %c0_17, %c0_18] : memref<9x3x16xbf16, #tpu.memory_space<vmem>>, vector<1x3x16xbf16>
    %26 = vector.shape_cast %25 : vector<1x3x16xbf16> to vector<3x16xbf16>
    %cst_19 = arith.constant dense<0.000000e+00> : vector<64x16xf32>
    %27 = tpu.matmul %24, %26, %cst_19 {dimension_numbers = #tpu.dot_dimension_numbers<[1], [0], [0], [1], [0, 0, 1, 1], [], []>} : vector<64x3xbf16>, vector<3x16xbf16>, vector<64x16xf32> -> vector<64x16xf32>
    %28 = arith.addf %23, %27 : vector<64x16xf32>
    %29 = vector.extract_strided_slice %4 {offsets = [320, 0], sizes = [64, 3], strides = [1, 1]} : vector<576x3xbf16> to vector<64x3xbf16>
    %c5 = arith.constant 5 : index
    %c0_20 = arith.constant 0 : index
    %c0_21 = arith.constant 0 : index
    %30 = vector.load %arg4[%c5, %c0_20, %c0_21] : memref<9x3x16xbf16, #tpu.memory_space<vmem>>, vector<1x3x16xbf16>
    %31 = vector.shape_cast %30 : vector<1x3x16xbf16> to vector<3x16xbf16>
    %cst_22 = arith.constant dense<0.000000e+00> : vector<64x16xf32>
    %32 = tpu.matmul %29, %31, %cst_22 {dimension_numbers = #tpu.dot_dimension_numbers<[1], [0], [0], [1], [0, 0, 1, 1], [], []>} : vector<64x3xbf16>, vector<3x16xbf16>, vector<64x16xf32> -> vector<64x16xf32>
    %33 = arith.addf %28, %32 : vector<64x16xf32>
    %34 = vector.extract_strided_slice %4 {offsets = [384, 0], sizes = [64, 3], strides = [1, 1]} : vector<576x3xbf16> to vector<64x3xbf16>
    %c6 = arith.constant 6 : index
    %c0_23 = arith.constant 0 : index
    %c0_24 = arith.constant 0 : index
    %35 = vector.load %arg4[%c6, %c0_23, %c0_24] : memref<9x3x16xbf16, #tpu.memory_space<vmem>>, vector<1x3x16xbf16>
    %36 = vector.shape_cast %35 : vector<1x3x16xbf16> to vector<3x16xbf16>
    %cst_25 = arith.constant dense<0.000000e+00> : vector<64x16xf32>
    %37 = tpu.matmul %34, %36, %cst_25 {dimension_numbers = #tpu.dot_dimension_numbers<[1], [0], [0], [1], [0, 0, 1, 1], [], []>} : vector<64x3xbf16>, vector<3x16xbf16>, vector<64x16xf32> -> vector<64x16xf32>
    %38 = arith.addf %33, %37 : vector<64x16xf32>
    %39 = vector.extract_strided_slice %4 {offsets = [448, 0], sizes = [64, 3], strides = [1, 1]} : vector<576x3xbf16> to vector<64x3xbf16>
    %c7 = arith.constant 7 : index
    %c0_26 = arith.constant 0 : index
    %c0_27 = arith.constant 0 : index
    %40 = vector.load %arg4[%c7, %c0_26, %c0_27] : memref<9x3x16xbf16, #tpu.memory_space<vmem>>, vector<1x3x16xbf16>
    %41 = vector.shape_cast %40 : vector<1x3x16xbf16> to vector<3x16xbf16>
    %cst_28 = arith.constant dense<0.000000e+00> : vector<64x16xf32>
    %42 = tpu.matmul %39, %41, %cst_28 {dimension_numbers = #tpu.dot_dimension_numbers<[1], [0], [0], [1], [0, 0, 1, 1], [], []>} : vector<64x3xbf16>, vector<3x16xbf16>, vector<64x16xf32> -> vector<64x16xf32>
    %43 = arith.addf %38, %42 : vector<64x16xf32>
    %44 = vector.extract_strided_slice %4 {offsets = [512, 0], sizes = [64, 3], strides = [1, 1]} : vector<576x3xbf16> to vector<64x3xbf16>
    %c8 = arith.constant 8 : index
    %c0_29 = arith.constant 0 : index
    %c0_30 = arith.constant 0 : index
    %45 = vector.load %arg4[%c8, %c0_29, %c0_30] : memref<9x3x16xbf16, #tpu.memory_space<vmem>>, vector<1x3x16xbf16>
    %46 = vector.shape_cast %45 : vector<1x3x16xbf16> to vector<3x16xbf16>
    %cst_31 = arith.constant dense<0.000000e+00> : vector<64x16xf32>
    %47 = tpu.matmul %44, %46, %cst_31 {dimension_numbers = #tpu.dot_dimension_numbers<[1], [0], [0], [1], [0, 0, 1, 1], [], []>} : vector<64x3xbf16>, vector<3x16xbf16>, vector<64x16xf32> -> vector<64x16xf32>
    %48 = arith.addf %43, %47 : vector<64x16xf32>
    %c0_32 = arith.constant 0 : index
    %c0_33 = arith.constant 0 : index
    %49 = vector.load %arg5[%c0_32, %c0_33] : memref<1x16xf32, #tpu.memory_space<vmem>>, vector<1x16xf32>
    %50 = vector.broadcast %49 : vector<1x16xf32> to vector<64x16xf32>
    %51 = arith.addf %48, %50 : vector<64x16xf32>
    %cst_34 = arith.constant 0.000000e+00 : f32
    %52 = vector.broadcast %cst_34 : f32 to vector<64x16xf32>
    %53 = arith.maximumf %51, %52 : vector<64x16xf32>
    %54 = vector.extract_strided_slice %53 {offsets = [0, 0], sizes = [16, 16], strides = [1, 1]} : vector<64x16xf32> to vector<16x16xf32>
    %55 = vector.extract_strided_slice %53 {offsets = [16, 0], sizes = [16, 16], strides = [1, 1]} : vector<64x16xf32> to vector<16x16xf32>
    %56 = arith.maximumf %54, %55 : vector<16x16xf32>
    %57 = vector.extract_strided_slice %53 {offsets = [32, 0], sizes = [16, 16], strides = [1, 1]} : vector<64x16xf32> to vector<16x16xf32>
    %58 = vector.extract_strided_slice %53 {offsets = [48, 0], sizes = [16, 16], strides = [1, 1]} : vector<64x16xf32> to vector<16x16xf32>
    %59 = arith.maximumf %57, %58 : vector<16x16xf32>
    %60 = arith.maximumf %56, %59 : vector<16x16xf32>
    %61 = arith.truncf %60 : vector<16x16xf32> to vector<16x16xbf16>
    %c0_35 = arith.constant 0 : index
    %c0_36 = arith.constant 0 : index
    %62 = vector.load %arg6[%c0_35, %c0_36] : memref<288x16xbf16, #tpu.memory_space<vmem>>, vector<288x16xbf16>
    %cst_37 = arith.constant dense<0.000000e+00> : vector<288x16xf32>
    %63 = tpu.matmul %62, %61, %cst_37 {dimension_numbers = #tpu.dot_dimension_numbers<[1], [0], [0], [1], [0, 0, 1, 1], [], []>} : vector<288x16xbf16>, vector<16x16xbf16>, vector<288x16xf32> -> vector<288x16xf32>
    %64 = arith.truncf %63 : vector<288x16xf32> to vector<288x16xbf16>
    %65 = vector.extract_strided_slice %64 {offsets = [0, 0], sizes = [32, 16], strides = [1, 1]} : vector<288x16xbf16> to vector<32x16xbf16>
    %c0_38 = arith.constant 0 : index
    %c0_39 = arith.constant 0 : index
    %c0_40 = arith.constant 0 : index
    %66 = vector.load %arg7[%c0_38, %c0_39, %c0_40] : memref<9x16x32xbf16, #tpu.memory_space<vmem>>, vector<1x16x32xbf16>
    %67 = vector.shape_cast %66 : vector<1x16x32xbf16> to vector<16x32xbf16>
    %cst_41 = arith.constant dense<0.000000e+00> : vector<32x32xf32>
    %68 = tpu.matmul %65, %67, %cst_41 {dimension_numbers = #tpu.dot_dimension_numbers<[1], [0], [0], [1], [0, 0, 1, 1], [], []>} : vector<32x16xbf16>, vector<16x32xbf16>, vector<32x32xf32> -> vector<32x32xf32>
    %69 = vector.extract_strided_slice %64 {offsets = [32, 0], sizes = [32, 16], strides = [1, 1]} : vector<288x16xbf16> to vector<32x16xbf16>
    %c1_42 = arith.constant 1 : index
    %c0_43 = arith.constant 0 : index
    %c0_44 = arith.constant 0 : index
    %70 = vector.load %arg7[%c1_42, %c0_43, %c0_44] : memref<9x16x32xbf16, #tpu.memory_space<vmem>>, vector<1x16x32xbf16>
    %71 = vector.shape_cast %70 : vector<1x16x32xbf16> to vector<16x32xbf16>
    %cst_45 = arith.constant dense<0.000000e+00> : vector<32x32xf32>
    %72 = tpu.matmul %69, %71, %cst_45 {dimension_numbers = #tpu.dot_dimension_numbers<[1], [0], [0], [1], [0, 0, 1, 1], [], []>} : vector<32x16xbf16>, vector<16x32xbf16>, vector<32x32xf32> -> vector<32x32xf32>
    %73 = arith.addf %68, %72 : vector<32x32xf32>
    %74 = vector.extract_strided_slice %64 {offsets = [64, 0], sizes = [32, 16], strides = [1, 1]} : vector<288x16xbf16> to vector<32x16xbf16>
    %c2_46 = arith.constant 2 : index
    %c0_47 = arith.constant 0 : index
    %c0_48 = arith.constant 0 : index
    %75 = vector.load %arg7[%c2_46, %c0_47, %c0_48] : memref<9x16x32xbf16, #tpu.memory_space<vmem>>, vector<1x16x32xbf16>
    %76 = vector.shape_cast %75 : vector<1x16x32xbf16> to vector<16x32xbf16>
    %cst_49 = arith.constant dense<0.000000e+00> : vector<32x32xf32>
    %77 = tpu.matmul %74, %76, %cst_49 {dimension_numbers = #tpu.dot_dimension_numbers<[1], [0], [0], [1], [0, 0, 1, 1], [], []>} : vector<32x16xbf16>, vector<16x32xbf16>, vector<32x32xf32> -> vector<32x32xf32>
    %78 = arith.addf %73, %77 : vector<32x32xf32>
    %79 = vector.extract_strided_slice %64 {offsets = [96, 0], sizes = [32, 16], strides = [1, 1]} : vector<288x16xbf16> to vector<32x16xbf16>
    %c3_50 = arith.constant 3 : index
    %c0_51 = arith.constant 0 : index
    %c0_52 = arith.constant 0 : index
    %80 = vector.load %arg7[%c3_50, %c0_51, %c0_52] : memref<9x16x32xbf16, #tpu.memory_space<vmem>>, vector<1x16x32xbf16>
    %81 = vector.shape_cast %80 : vector<1x16x32xbf16> to vector<16x32xbf16>
    %cst_53 = arith.constant dense<0.000000e+00> : vector<32x32xf32>
    %82 = tpu.matmul %79, %81, %cst_53 {dimension_numbers = #tpu.dot_dimension_numbers<[1], [0], [0], [1], [0, 0, 1, 1], [], []>} : vector<32x16xbf16>, vector<16x32xbf16>, vector<32x32xf32> -> vector<32x32xf32>
    %83 = arith.addf %78, %82 : vector<32x32xf32>
    %84 = vector.extract_strided_slice %64 {offsets = [128, 0], sizes = [32, 16], strides = [1, 1]} : vector<288x16xbf16> to vector<32x16xbf16>
    %c4_54 = arith.constant 4 : index
    %c0_55 = arith.constant 0 : index
    %c0_56 = arith.constant 0 : index
    %85 = vector.load %arg7[%c4_54, %c0_55, %c0_56] : memref<9x16x32xbf16, #tpu.memory_space<vmem>>, vector<1x16x32xbf16>
    %86 = vector.shape_cast %85 : vector<1x16x32xbf16> to vector<16x32xbf16>
    %cst_57 = arith.constant dense<0.000000e+00> : vector<32x32xf32>
    %87 = tpu.matmul %84, %86, %cst_57 {dimension_numbers = #tpu.dot_dimension_numbers<[1], [0], [0], [1], [0, 0, 1, 1], [], []>} : vector<32x16xbf16>, vector<16x32xbf16>, vector<32x32xf32> -> vector<32x32xf32>
    %88 = arith.addf %83, %87 : vector<32x32xf32>
    %89 = vector.extract_strided_slice %64 {offsets = [160, 0], sizes = [32, 16], strides = [1, 1]} : vector<288x16xbf16> to vector<32x16xbf16>
    %c5_58 = arith.constant 5 : index
    %c0_59 = arith.constant 0 : index
    %c0_60 = arith.constant 0 : index
    %90 = vector.load %arg7[%c5_58, %c0_59, %c0_60] : memref<9x16x32xbf16, #tpu.memory_space<vmem>>, vector<1x16x32xbf16>
    %91 = vector.shape_cast %90 : vector<1x16x32xbf16> to vector<16x32xbf16>
    %cst_61 = arith.constant dense<0.000000e+00> : vector<32x32xf32>
    %92 = tpu.matmul %89, %91, %cst_61 {dimension_numbers = #tpu.dot_dimension_numbers<[1], [0], [0], [1], [0, 0, 1, 1], [], []>} : vector<32x16xbf16>, vector<16x32xbf16>, vector<32x32xf32> -> vector<32x32xf32>
    %93 = arith.addf %88, %92 : vector<32x32xf32>
    %94 = vector.extract_strided_slice %64 {offsets = [192, 0], sizes = [32, 16], strides = [1, 1]} : vector<288x16xbf16> to vector<32x16xbf16>
    %c6_62 = arith.constant 6 : index
    %c0_63 = arith.constant 0 : index
    %c0_64 = arith.constant 0 : index
    %95 = vector.load %arg7[%c6_62, %c0_63, %c0_64] : memref<9x16x32xbf16, #tpu.memory_space<vmem>>, vector<1x16x32xbf16>
    %96 = vector.shape_cast %95 : vector<1x16x32xbf16> to vector<16x32xbf16>
    %cst_65 = arith.constant dense<0.000000e+00> : vector<32x32xf32>
    %97 = tpu.matmul %94, %96, %cst_65 {dimension_numbers = #tpu.dot_dimension_numbers<[1], [0], [0], [1], [0, 0, 1, 1], [], []>} : vector<32x16xbf16>, vector<16x32xbf16>, vector<32x32xf32> -> vector<32x32xf32>
    %98 = arith.addf %93, %97 : vector<32x32xf32>
    %99 = vector.extract_strided_slice %64 {offsets = [224, 0], sizes = [32, 16], strides = [1, 1]} : vector<288x16xbf16> to vector<32x16xbf16>
    %c7_66 = arith.constant 7 : index
    %c0_67 = arith.constant 0 : index
    %c0_68 = arith.constant 0 : index
    %100 = vector.load %arg7[%c7_66, %c0_67, %c0_68] : memref<9x16x32xbf16, #tpu.memory_space<vmem>>, vector<1x16x32xbf16>
    %101 = vector.shape_cast %100 : vector<1x16x32xbf16> to vector<16x32xbf16>
    %cst_69 = arith.constant dense<0.000000e+00> : vector<32x32xf32>
    %102 = tpu.matmul %99, %101, %cst_69 {dimension_numbers = #tpu.dot_dimension_numbers<[1], [0], [0], [1], [0, 0, 1, 1], [], []>} : vector<32x16xbf16>, vector<16x32xbf16>, vector<32x32xf32> -> vector<32x32xf32>
    %103 = arith.addf %98, %102 : vector<32x32xf32>
    %104 = vector.extract_strided_slice %64 {offsets = [256, 0], sizes = [32, 16], strides = [1, 1]} : vector<288x16xbf16> to vector<32x16xbf16>
    %c8_70 = arith.constant 8 : index
    %c0_71 = arith.constant 0 : index
    %c0_72 = arith.constant 0 : index
    %105 = vector.load %arg7[%c8_70, %c0_71, %c0_72] : memref<9x16x32xbf16, #tpu.memory_space<vmem>>, vector<1x16x32xbf16>
    %106 = vector.shape_cast %105 : vector<1x16x32xbf16> to vector<16x32xbf16>
    %cst_73 = arith.constant dense<0.000000e+00> : vector<32x32xf32>
    %107 = tpu.matmul %104, %106, %cst_73 {dimension_numbers = #tpu.dot_dimension_numbers<[1], [0], [0], [1], [0, 0, 1, 1], [], []>} : vector<32x16xbf16>, vector<16x32xbf16>, vector<32x32xf32> -> vector<32x32xf32>
    %108 = arith.addf %103, %107 : vector<32x32xf32>
    %c0_74 = arith.constant 0 : index
    %c0_75 = arith.constant 0 : index
    %109 = vector.load %arg8[%c0_74, %c0_75] : memref<1x32xf32, #tpu.memory_space<vmem>>, vector<1x32xf32>
    %110 = vector.broadcast %109 : vector<1x32xf32> to vector<32x32xf32>
    %111 = arith.addf %108, %110 : vector<32x32xf32>
    %cst_76 = arith.constant 0.000000e+00 : f32
    %112 = vector.broadcast %cst_76 : f32 to vector<32x32xf32>
    %113 = arith.maximumf %111, %112 : vector<32x32xf32>
    %114 = vector.extract_strided_slice %113 {offsets = [0, 0], sizes = [8, 32], strides = [1, 1]} : vector<32x32xf32> to vector<8x32xf32>
    %115 = vector.extract_strided_slice %113 {offsets = [8, 0], sizes = [8, 32], strides = [1, 1]} : vector<32x32xf32> to vector<8x32xf32>
    %116 = arith.maximumf %114, %115 : vector<8x32xf32>
    %117 = vector.extract_strided_slice %113 {offsets = [16, 0], sizes = [8, 32], strides = [1, 1]} : vector<32x32xf32> to vector<8x32xf32>
    %118 = vector.extract_strided_slice %113 {offsets = [24, 0], sizes = [8, 32], strides = [1, 1]} : vector<32x32xf32> to vector<8x32xf32>
    %119 = arith.maximumf %117, %118 : vector<8x32xf32>
    %120 = arith.maximumf %116, %119 : vector<8x32xf32>
    %121 = arith.truncf %120 : vector<8x32xf32> to vector<8x32xbf16>
    %c0_77 = arith.constant 0 : index
    %c0_78 = arith.constant 0 : index
    %122 = vector.load %arg9[%c0_77, %c0_78] : memref<288x8xbf16, #tpu.memory_space<vmem>>, vector<288x8xbf16>
    %cst_79 = arith.constant dense<0.000000e+00> : vector<288x32xf32>
    %123 = tpu.matmul %122, %121, %cst_79 {dimension_numbers = #tpu.dot_dimension_numbers<[1], [0], [0], [1], [0, 0, 1, 1], [], []>} : vector<288x8xbf16>, vector<8x32xbf16>, vector<288x32xf32> -> vector<288x32xf32>
    %124 = arith.truncf %123 : vector<288x32xf32> to vector<288x32xbf16>
    %125 = vector.extract_strided_slice %124 {offsets = [0, 0], sizes = [32, 32], strides = [1, 1]} : vector<288x32xbf16> to vector<32x32xbf16>
    %c0_80 = arith.constant 0 : index
    %c0_81 = arith.constant 0 : index
    %c0_82 = arith.constant 0 : index
    %126 = vector.load %arg10[%c0_80, %c0_81, %c0_82] : memref<9x32x64xbf16, #tpu.memory_space<vmem>>, vector<1x32x64xbf16>
    %127 = vector.shape_cast %126 : vector<1x32x64xbf16> to vector<32x64xbf16>
    %cst_83 = arith.constant dense<0.000000e+00> : vector<32x64xf32>
    %128 = tpu.matmul %125, %127, %cst_83 {dimension_numbers = #tpu.dot_dimension_numbers<[1], [0], [0], [1], [0, 0, 1, 1], [], []>} : vector<32x32xbf16>, vector<32x64xbf16>, vector<32x64xf32> -> vector<32x64xf32>
    %129 = vector.extract_strided_slice %124 {offsets = [32, 0], sizes = [32, 32], strides = [1, 1]} : vector<288x32xbf16> to vector<32x32xbf16>
    %c1_84 = arith.constant 1 : index
    %c0_85 = arith.constant 0 : index
    %c0_86 = arith.constant 0 : index
    %130 = vector.load %arg10[%c1_84, %c0_85, %c0_86] : memref<9x32x64xbf16, #tpu.memory_space<vmem>>, vector<1x32x64xbf16>
    %131 = vector.shape_cast %130 : vector<1x32x64xbf16> to vector<32x64xbf16>
    %cst_87 = arith.constant dense<0.000000e+00> : vector<32x64xf32>
    %132 = tpu.matmul %129, %131, %cst_87 {dimension_numbers = #tpu.dot_dimension_numbers<[1], [0], [0], [1], [0, 0, 1, 1], [], []>} : vector<32x32xbf16>, vector<32x64xbf16>, vector<32x64xf32> -> vector<32x64xf32>
    %133 = arith.addf %128, %132 : vector<32x64xf32>
    %134 = vector.extract_strided_slice %124 {offsets = [64, 0], sizes = [32, 32], strides = [1, 1]} : vector<288x32xbf16> to vector<32x32xbf16>
    %c2_88 = arith.constant 2 : index
    %c0_89 = arith.constant 0 : index
    %c0_90 = arith.constant 0 : index
    %135 = vector.load %arg10[%c2_88, %c0_89, %c0_90] : memref<9x32x64xbf16, #tpu.memory_space<vmem>>, vector<1x32x64xbf16>
    %136 = vector.shape_cast %135 : vector<1x32x64xbf16> to vector<32x64xbf16>
    %cst_91 = arith.constant dense<0.000000e+00> : vector<32x64xf32>
    %137 = tpu.matmul %134, %136, %cst_91 {dimension_numbers = #tpu.dot_dimension_numbers<[1], [0], [0], [1], [0, 0, 1, 1], [], []>} : vector<32x32xbf16>, vector<32x64xbf16>, vector<32x64xf32> -> vector<32x64xf32>
    %138 = arith.addf %133, %137 : vector<32x64xf32>
    %139 = vector.extract_strided_slice %124 {offsets = [96, 0], sizes = [32, 32], strides = [1, 1]} : vector<288x32xbf16> to vector<32x32xbf16>
    %c3_92 = arith.constant 3 : index
    %c0_93 = arith.constant 0 : index
    %c0_94 = arith.constant 0 : index
    %140 = vector.load %arg10[%c3_92, %c0_93, %c0_94] : memref<9x32x64xbf16, #tpu.memory_space<vmem>>, vector<1x32x64xbf16>
    %141 = vector.shape_cast %140 : vector<1x32x64xbf16> to vector<32x64xbf16>
    %cst_95 = arith.constant dense<0.000000e+00> : vector<32x64xf32>
    %142 = tpu.matmul %139, %141, %cst_95 {dimension_numbers = #tpu.dot_dimension_numbers<[1], [0], [0], [1], [0, 0, 1, 1], [], []>} : vector<32x32xbf16>, vector<32x64xbf16>, vector<32x64xf32> -> vector<32x64xf32>
    %143 = arith.addf %138, %142 : vector<32x64xf32>
    %144 = vector.extract_strided_slice %124 {offsets = [128, 0], sizes = [32, 32], strides = [1, 1]} : vector<288x32xbf16> to vector<32x32xbf16>
    %c4_96 = arith.constant 4 : index
    %c0_97 = arith.constant 0 : index
    %c0_98 = arith.constant 0 : index
    %145 = vector.load %arg10[%c4_96, %c0_97, %c0_98] : memref<9x32x64xbf16, #tpu.memory_space<vmem>>, vector<1x32x64xbf16>
    %146 = vector.shape_cast %145 : vector<1x32x64xbf16> to vector<32x64xbf16>
    %cst_99 = arith.constant dense<0.000000e+00> : vector<32x64xf32>
    %147 = tpu.matmul %144, %146, %cst_99 {dimension_numbers = #tpu.dot_dimension_numbers<[1], [0], [0], [1], [0, 0, 1, 1], [], []>} : vector<32x32xbf16>, vector<32x64xbf16>, vector<32x64xf32> -> vector<32x64xf32>
    %148 = arith.addf %143, %147 : vector<32x64xf32>
    %149 = vector.extract_strided_slice %124 {offsets = [160, 0], sizes = [32, 32], strides = [1, 1]} : vector<288x32xbf16> to vector<32x32xbf16>
    %c5_100 = arith.constant 5 : index
    %c0_101 = arith.constant 0 : index
    %c0_102 = arith.constant 0 : index
    %150 = vector.load %arg10[%c5_100, %c0_101, %c0_102] : memref<9x32x64xbf16, #tpu.memory_space<vmem>>, vector<1x32x64xbf16>
    %151 = vector.shape_cast %150 : vector<1x32x64xbf16> to vector<32x64xbf16>
    %cst_103 = arith.constant dense<0.000000e+00> : vector<32x64xf32>
    %152 = tpu.matmul %149, %151, %cst_103 {dimension_numbers = #tpu.dot_dimension_numbers<[1], [0], [0], [1], [0, 0, 1, 1], [], []>} : vector<32x32xbf16>, vector<32x64xbf16>, vector<32x64xf32> -> vector<32x64xf32>
    %153 = arith.addf %148, %152 : vector<32x64xf32>
    %154 = vector.extract_strided_slice %124 {offsets = [192, 0], sizes = [32, 32], strides = [1, 1]} : vector<288x32xbf16> to vector<32x32xbf16>
    %c6_104 = arith.constant 6 : index
    %c0_105 = arith.constant 0 : index
    %c0_106 = arith.constant 0 : index
    %155 = vector.load %arg10[%c6_104, %c0_105, %c0_106] : memref<9x32x64xbf16, #tpu.memory_space<vmem>>, vector<1x32x64xbf16>
    %156 = vector.shape_cast %155 : vector<1x32x64xbf16> to vector<32x64xbf16>
    %cst_107 = arith.constant dense<0.000000e+00> : vector<32x64xf32>
    %157 = tpu.matmul %154, %156, %cst_107 {dimension_numbers = #tpu.dot_dimension_numbers<[1], [0], [0], [1], [0, 0, 1, 1], [], []>} : vector<32x32xbf16>, vector<32x64xbf16>, vector<32x64xf32> -> vector<32x64xf32>
    %158 = arith.addf %153, %157 : vector<32x64xf32>
    %159 = vector.extract_strided_slice %124 {offsets = [224, 0], sizes = [32, 32], strides = [1, 1]} : vector<288x32xbf16> to vector<32x32xbf16>
    %c7_108 = arith.constant 7 : index
    %c0_109 = arith.constant 0 : index
    %c0_110 = arith.constant 0 : index
    %160 = vector.load %arg10[%c7_108, %c0_109, %c0_110] : memref<9x32x64xbf16, #tpu.memory_space<vmem>>, vector<1x32x64xbf16>
    %161 = vector.shape_cast %160 : vector<1x32x64xbf16> to vector<32x64xbf16>
    %cst_111 = arith.constant dense<0.000000e+00> : vector<32x64xf32>
    %162 = tpu.matmul %159, %161, %cst_111 {dimension_numbers = #tpu.dot_dimension_numbers<[1], [0], [0], [1], [0, 0, 1, 1], [], []>} : vector<32x32xbf16>, vector<32x64xbf16>, vector<32x64xf32> -> vector<32x64xf32>
    %163 = arith.addf %158, %162 : vector<32x64xf32>
    %164 = vector.extract_strided_slice %124 {offsets = [256, 0], sizes = [32, 32], strides = [1, 1]} : vector<288x32xbf16> to vector<32x32xbf16>
    %c8_112 = arith.constant 8 : index
    %c0_113 = arith.constant 0 : index
    %c0_114 = arith.constant 0 : index
    %165 = vector.load %arg10[%c8_112, %c0_113, %c0_114] : memref<9x32x64xbf16, #tpu.memory_space<vmem>>, vector<1x32x64xbf16>
    %166 = vector.shape_cast %165 : vector<1x32x64xbf16> to vector<32x64xbf16>
    %cst_115 = arith.constant dense<0.000000e+00> : vector<32x64xf32>
    %167 = tpu.matmul %164, %166, %cst_115 {dimension_numbers = #tpu.dot_dimension_numbers<[1], [0], [0], [1], [0, 0, 1, 1], [], []>} : vector<32x32xbf16>, vector<32x64xbf16>, vector<32x64xf32> -> vector<32x64xf32>
    %168 = arith.addf %163, %167 : vector<32x64xf32>
    %c0_116 = arith.constant 0 : index
    %c0_117 = arith.constant 0 : index
    %169 = vector.load %arg11[%c0_116, %c0_117] : memref<1x64xf32, #tpu.memory_space<vmem>>, vector<1x64xf32>
    %170 = vector.broadcast %169 : vector<1x64xf32> to vector<32x64xf32>
    %171 = arith.addf %168, %170 : vector<32x64xf32>
    %cst_118 = arith.constant 0.000000e+00 : f32
    %172 = vector.broadcast %cst_118 : f32 to vector<32x64xf32>
    %173 = arith.maximumf %171, %172 : vector<32x64xf32>
    %174 = vector.extract_strided_slice %173 {offsets = [0, 0], sizes = [8, 64], strides = [1, 1]} : vector<32x64xf32> to vector<8x64xf32>
    %175 = vector.extract_strided_slice %173 {offsets = [8, 0], sizes = [8, 64], strides = [1, 1]} : vector<32x64xf32> to vector<8x64xf32>
    %176 = arith.maximumf %174, %175 : vector<8x64xf32>
    %177 = vector.extract_strided_slice %173 {offsets = [16, 0], sizes = [8, 64], strides = [1, 1]} : vector<32x64xf32> to vector<8x64xf32>
    %178 = vector.extract_strided_slice %173 {offsets = [24, 0], sizes = [8, 64], strides = [1, 1]} : vector<32x64xf32> to vector<8x64xf32>
    %179 = arith.maximumf %177, %178 : vector<8x64xf32>
    %180 = arith.maximumf %176, %179 : vector<8x64xf32>
    %c0_119 = arith.constant 0 : index
    %c0_120 = arith.constant 0 : index
    %181 = vector.load %arg12[%c0_119, %c0_120] : memref<1x4xbf16, #tpu.memory_space<vmem>>, vector<1x4xbf16>
    %c0_121 = arith.constant 0 : index
    %c0_122 = arith.constant 0 : index
    %c0_123 = arith.constant 0 : index
    %182 = vector.load %arg2[%c0_121, %c0_122, %c0_123] : memref<1x4x64xbf16, #tpu.memory_space<vmem>>, vector<1x4x64xbf16>
    %183 = vector.shape_cast %182 : vector<1x4x64xbf16> to vector<4x64xbf16>
    %cst_124 = arith.constant dense<0.000000e+00> : vector<1x64xf32>
    %184 = tpu.matmul %181, %183, %cst_124 {dimension_numbers = #tpu.dot_dimension_numbers<[1], [0], [0], [1], [0, 0, 1, 1], [], []>} : vector<1x4xbf16>, vector<4x64xbf16>, vector<1x64xf32> -> vector<1x64xf32>
    %c0_125 = arith.constant 0 : index
    %c0_126 = arith.constant 0 : index
    %185 = vector.load %arg13[%c0_125, %c0_126] : memref<1x1xf32, #tpu.memory_space<vmem>>, vector<1x1xf32>
    %186 = vector.broadcast %185 : vector<1x1xf32> to vector<1x64xf32>
    %187 = arith.addf %184, %186 : vector<1x64xf32>
    %cst_127 = arith.constant 0.000000e+00 : f32
    %188 = vector.broadcast %cst_127 : f32 to vector<1x64xf32>
    %189 = arith.maximumf %187, %188 : vector<1x64xf32>
    %190 = arith.truncf %180 : vector<8x64xf32> to vector<8x64xbf16>
    %c0_128 = arith.constant 0 : index
    %c0_129 = arith.constant 0 : index
    %191 = vector.load %arg14[%c0_128, %c0_129] : memref<64x128xbf16, #tpu.memory_space<vmem>>, vector<64x128xbf16>
    %cst_130 = arith.constant dense<0.000000e+00> : vector<8x128xf32>
    %192 = tpu.matmul %190, %191, %cst_130 {dimension_numbers = #tpu.dot_dimension_numbers<[1], [0], [0], [1], [0, 0, 1, 1], [], []>} : vector<8x64xbf16>, vector<64x128xbf16>, vector<8x128xf32> -> vector<8x128xf32>
    %193 = arith.truncf %189 : vector<1x64xf32> to vector<1x64xbf16>
    %c0_131 = arith.constant 0 : index
    %c0_132 = arith.constant 0 : index
    %194 = vector.load %arg15[%c0_131, %c0_132] : memref<64x128xbf16, #tpu.memory_space<vmem>>, vector<64x128xbf16>
    %cst_133 = arith.constant dense<0.000000e+00> : vector<1x128xf32>
    %195 = tpu.matmul %193, %194, %cst_133 {dimension_numbers = #tpu.dot_dimension_numbers<[1], [0], [0], [1], [0, 0, 1, 1], [], []>} : vector<1x64xbf16>, vector<64x128xbf16>, vector<1x128xf32> -> vector<1x128xf32>
    %196 = vector.broadcast %195 : vector<1x128xf32> to vector<8x128xf32>
    %197 = arith.addf %192, %196 : vector<8x128xf32>
    %c0_134 = arith.constant 0 : index
    %c0_135 = arith.constant 0 : index
    %198 = vector.load %arg16[%c0_134, %c0_135] : memref<1x128xf32, #tpu.memory_space<vmem>>, vector<1x128xf32>
    %199 = vector.broadcast %198 : vector<1x128xf32> to vector<8x128xf32>
    %200 = arith.addf %197, %199 : vector<8x128xf32>
    %cst_136 = arith.constant 0.000000e+00 : f32
    %201 = vector.broadcast %cst_136 : f32 to vector<8x128xf32>
    %202 = arith.maximumf %200, %201 : vector<8x128xf32>
    %203 = arith.truncf %202 : vector<8x128xf32> to vector<8x128xbf16>
    %c0_137 = arith.constant 0 : index
    %c0_138 = arith.constant 0 : index
    %204 = vector.load %arg17[%c0_137, %c0_138] : memref<128x1xbf16, #tpu.memory_space<vmem>>, vector<128x1xbf16>
    %cst_139 = arith.constant dense<0.000000e+00> : vector<8x1xf32>
    %205 = tpu.matmul %203, %204, %cst_139 {dimension_numbers = #tpu.dot_dimension_numbers<[1], [0], [0], [1], [0, 0, 1, 1], [], []>} : vector<8x128xbf16>, vector<128x1xbf16>, vector<8x1xf32> -> vector<8x1xf32>
    %c0_140 = arith.constant 0 : index
    %c0_141 = arith.constant 0 : index
    %206 = vector.load %arg18[%c0_140, %c0_141] : memref<1x1xf32, #tpu.memory_space<vmem>>, vector<1x1xf32>
    %207 = vector.broadcast %206 : vector<1x1xf32> to vector<8x1xf32>
    %208 = arith.addf %205, %207 : vector<8x1xf32>
    %c0_142 = arith.constant 0 : index
    %c0_143 = arith.constant 0 : index
    %c0_144 = arith.constant 0 : index
    %209 = vector.load %arg19[%c0_142, %c0_143, %c0_144] : memref<1x8x1xf32, #tpu.memory_space<vmem>>, vector<1x8x1xf32>
    %210 = vector.shape_cast %209 : vector<1x8x1xf32> to vector<8x1xf32>
    %211 = vector.shape_cast %208 : vector<8x1xf32> to vector<1x8x1xf32>
    tpu.vector_store %arg19[%c0_142, %c0_143, %c0_144], %211 {strides = array<i32>} : memref<1x8x1xf32, #tpu.memory_space<vmem>>, vector<1x8x1xf32>,
    return
  }
  func.func @transform_0(%arg0: i32) -> (i32, i32, i32) {
    %c0_i32 = arith.constant 0 : i32
    %c0_i32_0 = arith.constant 0 : i32
    %c0_i32_1 = arith.constant 0 : i32
    return %arg0, %c0_i32, %c0_i32_0 : i32, i32, i32
  }
  func.func @transform_1(%arg0: i32) -> (i32, i32, i32) {
    %c0_i32 = arith.constant 0 : i32
    %c0_i32_0 = arith.constant 0 : i32
    %c0_i32_1 = arith.constant 0 : i32
    return %arg0, %c0_i32, %c0_i32_0 : i32, i32, i32
  }
  func.func @transform_2(%arg0: i32) -> (i32, i32) {
    %c0_i32 = arith.constant 0 : i32
    %c0_i32_0 = arith.constant 0 : i32
    %c0_i32_1 = arith.constant 0 : i32
    return %c0_i32, %c0_i32_0 : i32, i32
  }
  func.func @transform_3(%arg0: i32) -> (i32, i32, i32) {
    %c0_i32 = arith.constant 0 : i32
    %c0_i32_0 = arith.constant 0 : i32
    %c0_i32_1 = arith.constant 0 : i32
    %c0_i32_2 = arith.constant 0 : i32
    return %c0_i32, %c0_i32_0, %c0_i32_1 : i32, i32, i32
  }
  func.func @transform_4(%arg0: i32) -> (i32, i32) {
    %c0_i32 = arith.constant 0 : i32
    %c0_i32_0 = arith.constant 0 : i32
    %c0_i32_1 = arith.constant 0 : i32
    return %c0_i32, %c0_i32_0 : i32, i32
  }
  func.func @transform_5(%arg0: i32) -> (i32, i32) {
    %c0_i32 = arith.constant 0 : i32
    %c0_i32_0 = arith.constant 0 : i32
    %c0_i32_1 = arith.constant 0 : i32
    return %c0_i32, %c0_i32_0 : i32, i32
  }
  func.func @transform_6(%arg0: i32) -> (i32, i32, i32) {
    %c0_i32 = arith.constant 0 : i32
    %c0_i32_0 = arith.constant 0 : i32
    %c0_i32_1 = arith.constant 0 : i32
    %c0_i32_2 = arith.constant 0 : i32
    return %c0_i32, %c0_i32_0, %c0_i32_1 : i32, i32, i32
  }
  func.func @transform_7(%arg0: i32) -> (i32, i32) {
    %c0_i32 = arith.constant 0 : i32
    %c0_i32_0 = arith.constant 0 : i32
    %c0_i32_1 = arith.constant 0 : i32
    return %c0_i32, %c0_i32_0 : i32, i32
  }
  func.func @transform_8(%arg0: i32) -> (i32, i32) {
    %c0_i32 = arith.constant 0 : i32
    %c0_i32_0 = arith.constant 0 : i32
    %c0_i32_1 = arith.constant 0 : i32
    return %c0_i32, %c0_i32_0 : i32, i32
  }
  func.func @transform_9(%arg0: i32) -> (i32, i32, i32) {
    %c0_i32 = arith.constant 0 : i32
    %c0_i32_0 = arith.constant 0 : i32
    %c0_i32_1 = arith.constant 0 : i32
    %c0_i32_2 = arith.constant 0 : i32
    return %c0_i32, %c0_i32_0, %c0_i32_1 : i32, i32, i32
  }
  func.func @transform_10(%arg0: i32) -> (i32, i32) {
    %c0_i32 = arith.constant 0 : i32
    %c0_i32_0 = arith.constant 0 : i32
    %c0_i32_1 = arith.constant 0 : i32
    return %c0_i32, %c0_i32_0 : i32, i32
  }
  func.func @transform_11(%arg0: i32) -> (i32, i32) {
    %c0_i32 = arith.constant 0 : i32
    %c0_i32_0 = arith.constant 0 : i32
    %c0_i32_1 = arith.constant 0 : i32
    return %c0_i32, %c0_i32_0 : i32, i32
  }
  func.func @transform_12(%arg0: i32) -> (i32, i32) {
    %c0_i32 = arith.constant 0 : i32
    %c0_i32_0 = arith.constant 0 : i32
    %c0_i32_1 = arith.constant 0 : i32
    return %c0_i32, %c0_i32_0 : i32, i32
  }
  func.func @transform_13(%arg0: i32) -> (i32, i32) {
    %c0_i32 = arith.constant 0 : i32
    %c0_i32_0 = arith.constant 0 : i32
    %c0_i32_1 = arith.constant 0 : i32
    return %c0_i32, %c0_i32_0 : i32, i32
  }
  func.func @transform_14(%arg0: i32) -> (i32, i32) {
    %c0_i32 = arith.constant 0 : i32
    %c0_i32_0 = arith.constant 0 : i32
    %c0_i32_1 = arith.constant 0 : i32
    return %c0_i32, %c0_i32_0 : i32, i32
  }
  func.func @transform_15(%arg0: i32) -> (i32, i32) {
    %c0_i32 = arith.constant 0 : i32
    %c0_i32_0 = arith.constant 0 : i32
    %c0_i32_1 = arith.constant 0 : i32
    return %c0_i32, %c0_i32_0 : i32, i32
  }
  func.func @transform_16(%arg0: i32) -> (i32, i32) {
    %c0_i32 = arith.constant 0 : i32
    %c0_i32_0 = arith.constant 0 : i32
    %c0_i32_1 = arith.constant 0 : i32
    return %c0_i32, %c0_i32_0 : i32, i32
  }
  func.func @transform_17(%arg0: i32) -> (i32, i32) {
    %c0_i32 = arith.constant 0 : i32
    %c0_i32_0 = arith.constant 0 : i32
    %c0_i32_1 = arith.constant 0 : i32
    return %c0_i32, %c0_i32_0 : i32, i32
  }
  func.func @transform_18(%arg0: i32) -> (i32, i32, i32) {
    %c0_i32 = arith.constant 0 : i32
    %c0_i32_0 = arith.constant 0 : i32
    %c0_i32_1 = arith.constant 0 : i32
    return %arg0, %c0_i32, %c0_i32_0 : i32, i32, i32
  }
}

</mosaic_0001>

<bundles_post_ra>
// kernel: tpu_custom_call.1
= control target key start
LH: loop header
LB: loop body
LE: loop exit
PB: predicated region body
PF: predicated region fallthrough
CT: control target
= control target key end

     0   :  { %s6482_s0 = inlined_call_operand.vmem [shape: bf16[2,64,3], index: 0, kind: input, shape index: {}]   ;;  %s6483_s1 = inlined_call_operand.vmem [shape: bf16[2,4,64], index: 1, kind: input, shape index: {}]   ;;  %s6484_s2 = inlined_call_operand.vmem [shape: bf16[576,64], index: 2, kind: input, shape index: {}]   ;;  %s6485_s3 = inlined_call_operand.vmem [shape: bf16[9,3,16], index: 3, kind: input, shape index: {}]   ;;  %s6486_s4 = inlined_call_operand.vmem [shape: f32[1,16], index: 4, kind: input, shape index: {}]   ;;  %s6487_s5 = inlined_call_operand.vmem [shape: bf16[288,16], index: 5, kind: input, shape index: {}]   ;;  %s6488_s6 = inlined_call_operand.vmem [shape: bf16[9,16,32], index: 6, kind: input, shape index: {}]   ;;  %s6489_s7 = inlined_call_operand.vmem [shape: f32[1,32], index: 7, kind: input, shape index: {}]   ;;  %s6490_s8 = inlined_call_operand.vmem [shape: bf16[288,8], index: 8, kind: input, shape index: {}]   ;;  %s6491_s9 = inlined_call_operand.vmem [shape: bf16[9,32,64], index: 9, kind: input, shape index: {}]   ;;  %s6492_s10 = inlined_call_operand.vmem [shape: f32[1,64], index: 10, kind: input, shape index: {}]   ;;  %s6493_s11 = inlined_call_operand.vmem [shape: bf16[1,4], index: 11, kind: input, shape index: {}]   ;;  %s6494_s12 = inlined_call_operand.<no memory space> [shape: f32[1,1], index: 12, kind: input, shape index: {}]   ;;  %s6495_s13 = inlined_call_operand.vmem [shape: bf16[64,128], index: 13, kind: input, shape index: {}]   ;;  %s6496_s14 = inlined_call_operand.vmem [shape: bf16[64,128], index: 14, kind: input, shape index: {}]   ;;  %s6497_s15 = inlined_call_operand.vmem [shape: f32[1,128], index: 15, kind: input, shape index: {}]   ;;  %s6498_s16 = inlined_call_operand.vmem [shape: bf16[128,1], index: 16, kind: input, shape index: {}]   ;;  %s6499_s18 = inlined_call_operand.vmem [shape: f32[2,8,1], index: 18, kind: output, shape index: {}]   ;;  %s6500_s17 = inlined_call_operand.<no memory space> [shape: f32[1,1], index: 17, kind: input, shape index: {}]  }
   0x1   :  { %6502 = sst [smem:[#allocation4_spill]] %s6482_s0  ;;  %v23_v0 = vstv %s6494_s12  ;;  %v25_v1 = vstv %s6500_s17  ;;  %s5864_s0 = smov 0  }
   0x2   :  { %6503 = sst [smem:[#allocation5_spill]] %s6483_s1  ;;  %24 = vst [vmem:[#allocation2] sm:$0x1] %v23_v0  ;;  %26 = vst [vmem:[#allocation3] sm:$0x1] %v25_v1 }
   0x3   :  { %6504 = sst [smem:[#allocation6_spill]] %s6484_s2 }
   0x4 LB: > { %s4650_s19 = sadd.s32 4294967295, %s5757_s0   ;;  %p4654_p0 = scmp.ge.s32.totalorder %s5757_s0, 1  ;;  %s5757_s0 = sphi %s5864_s0, %s32_s0  }
   0x5   : > { %p525_p1 = scmp.lt.s32.totalorder %s5757_s0, 3 }
   0x7   : > { %p526_p2 = pnand %p4654_p0, %p525_p1 }
   0x8   : > { %p582_p3 = scmp.lt.s32.totalorder (!%p526_p2), %s4650_s19, 1  ;;  %s6505_s1 = sld [smem:[#allocation6_spill]] (!%p526_p2) }
   0x9   : > { %529 = sbr.rel (%p526_p2) target bundleno = 1955 (0x7a3), region = 92  ;;  %s6506_s2 = sld [smem:[#allocation4_spill]] (!%p526_p2) }
   0xe   : > { %v5636_v2 = vld [vmem:[%s6505_s1] sm:$0xff]   ;;  %vm880_vm0 = vcmask 523264   ;;  %s6509_s19 = smov (!%p582_p3, %s4650_s19), 1  ;;  %v5637_v7 = vld [vmem:[%s6505_s1 + $0x8] sm:$0xff]   ;;  %v5638_v8 = vld [vmem:[%s6505_s1 + $0x10] sm:$0xff]   ;;  %vm1362_vm1 = vcmask 1040384  }
   0xf   : > { %5204 = vmatprep.mubr.msk.bf16.mxu0 %vm880_vm0, %v5636_v2  ;;  %s4988_s20 = sshll.u32 %s6509_s19, 5  ;;  %v5639_v9 = vld [vmem:[%s6505_s1 + $0x18] sm:$0xff]   ;;  %v5640_v10 = vld [vmem:[%s6505_s1 + $0x20] sm:$0xff]   ;;  %v5641_v11 = vld [vmem:[%s6505_s1 + $0x28] sm:$0xff]   ;;  %vm1363_vm2 = vcmask 1041408   ;;  %v5759_v12 = vmov 65535  }
  0x10   : > { %s586_s23 = scalar_lea.vmem %s6506_s2, %s4988_s20  ;;  %v1364_v13 = vsel %vm1362_vm1, 4294967295, %v5759_v12  ;;  %v5642_v14 = vld [vmem:[%s6505_s1 + $0x30] sm:$0xff]   ;;  %v4735_v16 = vld [vmem:[%s6485_s3 + $0x2] sm:$0x3]  ;;  %v5643_v18 = vld [vmem:[%s6505_s1 + $0x38] sm:$0xff]   ;;  %vm1349_vm3 = vcmask 23552  }
  0x11   : > { %v5632_v3 = vld [vmem:[%s586_s23 + $0x18] sm:$0xff]   ;;  %v5633_v4 = vld [vmem:[%s586_s23 + $0x10] sm:$0xff]   ;;  %v5634_v5 = vld [vmem:[%s586_s23 + $0x8] sm:$0xff]   ;;  %v5905_v15 = vsel %vm1363_vm2, %v1364_v13, 0  ;;  %vm2300_vm4 = vcmask 130048   ;;  %vm3298_vm5 = vcmask 64512  }
  0x12   : > { %5196 = vmatprep.subr.bf16.mxu0 %v5632_v3  ;;  %v5635_v6 = vld [vmem:[%s586_s23] sm:$0xff]   ;;  %v1367_v17 = vand.u32 %v4735_v16, %v5905_v15  ;;  %v5645_v20 = vld [vmem:[%s6505_s1 + $0x48] sm:$0xff]   ;;  %v5646_v21 = vld [vmem:[%s6505_s1 + $0x50] sm:$0xff]   ;;  %vm3353_vm6 = vcmask 1043456   ;;  %s4657_s30 = sshll.u32 %s6509_s19, 1  ;;  %s6507_s20 = sld [smem:[#allocation5_spill]] }
  0x13   : > { %5197 = vmatpush3.bf16.msra.mxu0 %v5632_v3  ;;  %v5644_v19 = vld [vmem:[%s6505_s1 + $0x40] sm:$0xff]   ;;  %v5647_v22 = vld [vmem:[%s6505_s1 + $0x58] sm:$0xff]   ;;  %v5649_v24 = vld [vmem:[%s6505_s1 + $0x68] sm:$0xff]   ;;  %vm4258_vm7 = vcmask 31744   ;;  %vm5761_vm8 = vmmov 0   ;;  %vm3573_vm9 = vcmask 261120  }
  0x14   : > { %5198 = vmatprep.subr.bf16.mxu0 %v5633_v4  ;;  %v5648_v23 = vld [vmem:[%s6505_s1 + $0x60] sm:$0xff]   ;;  %v5650_v25 = vld [vmem:[%s6505_s1 + $0x70] sm:$0xff]   ;;  %v5651_v26 = vld [vmem:[%s6505_s1 + $0x78] sm:$0xff]   ;;  %vm4583_vm10 = vcmask 7168  }
  0x15   : > { %v5652_v27 = vld [vmem:[%s6505_s1 + $0x80] sm:$0xff]   ;;  %v5653_v28 = vld [vmem:[%s6505_s1 + $0x88] sm:$0xff]   ;;  %v5654_v29 = vld [vmem:[%s6505_s1 + $0x90] sm:$0xff]  }
  0x16   : > { %v5655_v30 = vld [vmem:[%s6505_s1 + $0x98] sm:$0xff]   ;;  %v1346_v31 = vld [vmem:[%s6485_s3] sm:$0x3]  ;;  %v5657_v34 = vld [vmem:[%s6505_s1 + $0xa8] sm:$0xff]  }
  0x17   : > { %5199 = vmatpush3.bf16.msra.mxu0 %v5633_v4  ;;  %v1447_v32 = vand.u32 %v5905_v15, %v1346_v31  ;;  %v5656_v33 = vld [vmem:[%s6505_s1 + $0xa0] sm:$0xff]   ;;  %v5658_v35 = vld [vmem:[%s6505_s1 + $0xb0] sm:$0xff]   ;;  %v5659_v36 = vld [vmem:[%s6505_s1 + $0xb8] sm:$0xff]  }
  0x18   : > { %5200 = vmatprep.subr.bf16.mxu0 %v5634_v5  ;;  %v5660_v37 = vld [vmem:[%s6505_s1 + $0xc0] sm:$0xff]   ;;  %v5661_v38 = vld [vmem:[%s6505_s1 + $0xc8] sm:$0xff]   ;;  %v5662_v39 = vld [vmem:[%s6505_s1 + $0xd0] sm:$0xff]   ;;  %s590_s21 = scalar_lea.vmem %s6507_s20, %s4657_s30  ;;  %s4658_s20 = sshll.u32 %s6509_s19, 3 }
  0x19   : > { %5286 = vmatprep.subr.bf16.mxu1 %v1447_v32  ;;  %v4744_v40 = vld [vmem:[%s6485_s3 + $0x4] sm:$0x3]  ;;  %v5663_v41 = vld [vmem:[%s6505_s1 + $0xd8] sm:$0xff]   ;;  %v5665_v44 = vld [vmem:[%s6505_s1 + $0xe8] sm:$0xff]   ;;  %s594_s2 = scalar_lea.vmem %s6499_s18, %s4658_s20 }
  0x1a   : > { %5287 = vmatpush3.bf16.msra.mxu1 %v1447_v32  ;;  %v1529_v42 = vand.u32 %v4744_v40, %v5905_v15  ;;  %v5664_v43 = vld [vmem:[%s6505_s1 + $0xe0] sm:$0xff]   ;;  %v5666_v45 = vld [vmem:[%s6505_s1 + $0xf0] sm:$0xff]   ;;  %v5667_v46 = vld [vmem:[%s6505_s1 + $0xf8] sm:$0xff]  }
  0x1b   : > { %5201 = vmatpush3.bf16.msra.mxu0 %v5634_v5  ;;  %v5668_v47 = vld [vmem:[%s6505_s1 + $0x100] sm:$0xff]   ;;  %v5669_v48 = vld [vmem:[%s6505_s1 + $0x108] sm:$0xff]   ;;  %v5670_v49 = vld [vmem:[%s6505_s1 + $0x110] sm:$0xff]  }
  0x1c   : > { %5202 = vmatprep.subr.bf16.mxu0 %v5635_v6  ;;  %5296 = vmatprep.subr.bf16.mxu1 %v1529_v42  ;;  %v5671_v50 = vld [vmem:[%s6505_s1 + $0x118] sm:$0xff]   ;;  %v4749_v54 = vld [vmem:[%s6485_s3 + $0x6] sm:$0x3]  ;;  %v4759_v31 = vld [vmem:[%s6485_s3 + $0xa] sm:$0x3] }
  0x1d   : > { %v1619_v59 = vand.u32 %v4749_v54, %v5905_v15 }
  0x1f   : > { %5203 = vmatpush3.bf16.msra.mxu0 %v5635_v6 }
  0x20   : > { %5276 = vmatprep.subr.bf16.mxu0 %v1367_v17 }
  0x22   : > { %5205 = vmatmul.mubr.msk.bf16.vlgmr.msra.gmra.mxu0 %vm880_vm0, %v5637_v7 }
  0x23   : > { %5208 = vmatprep.mubr.msk.bf16.mxu0 %vm880_vm0, %v5638_v8  ;;  %5277 = vmatpush3.bf16.msra.mxu0 %v1367_v17  ;;  %v4754_v17 = vld [vmem:[%s6485_s3 + $0x8] sm:$0x3] }
  0x2a   : > { %5209 = vmatmul.mubr.msk.bf16.gmra.mxu0 %vm880_vm0, %v5639_v9 }
  0x2b   : > { %5212 = vmatprep.mubr.msk.bf16.mxu0 %vm880_vm0, %v5640_v10 }
  0x32   : > { %5213 = vmatmul.mubr.msk.bf16.gmra.mxu0 %vm880_vm0, %v5641_v11 }
  0x33   : > { %5216 = vmatprep.mubr.msk.bf16.mxu0 %vm880_vm0, %v5642_v14 }
  0x3a   : > { %5217 = vmatmul.mubr.msk.bf16.gmra.mxu0 %vm880_vm0, %v5643_v18 }
  0x3b   : > { %5220 = vmatprep.mubr.msk.bf16.mxu0 %vm880_vm0, %v5644_v19 }
  0x42   : > { %5221 = vmatmul.mubr.msk.bf16.gmra.mxu0 %vm880_vm0, %v5645_v20 }
  0x43   : > { %5224 = vmatprep.mubr.msk.bf16.mxu0 %vm880_vm0, %v5646_v21 }
  0x4a   : > { %5225 = vmatmul.mubr.msk.bf16.gmra.mxu0 %vm880_vm0, %v5647_v22  ;;  %v1709_v22 = vand.u32 %v4754_v17, %v5905_v15 }
  0x4b   : > { %5228 = vmatprep.mubr.msk.bf16.mxu0 %vm880_vm0, %v5648_v23 }
  0x52   : > { %5229 = vmatmul.mubr.msk.bf16.gmra.mxu0 %vm880_vm0, %v5649_v24 }
  0x53   : > { %5232 = vmatprep.mubr.msk.bf16.mxu0 %vm880_vm0, %v5650_v25 }
  0x5a   : > { %5233 = vmatmul.mubr.msk.bf16.gmra.mxu0 %vm880_vm0, %v5651_v26 }
  0x5b   : > { %5236 = vmatprep.mubr.msk.bf16.mxu0 %vm880_vm0, %v5652_v27 }
  0x62   : > { %5237 = vmatmul.mubr.msk.bf16.gmra.mxu0 %vm880_vm0, %v5653_v28 }
  0x63   : > { %5240 = vmatprep.mubr.msk.bf16.mxu0 %vm880_vm0, %v5654_v29 }
  0x6a   : > { %5241 = vmatmul.mubr.msk.bf16.gmra.mxu0 %vm880_vm0, %v5655_v30 }
  0x6b   : > { %5244 = vmatprep.mubr.msk.bf16.mxu0 %vm880_vm0, %v5656_v33 }
  0x72   : > { %5245 = vmatmul.mubr.msk.bf16.gmra.mxu0 %vm880_vm0, %v5657_v34 }
  0x73   : > { %5248 = vmatprep.mubr.msk.bf16.mxu0 %vm880_vm0, %v5658_v35 }
  0x7a   : > { %5249 = vmatmul.mubr.msk.bf16.gmra.mxu0 %vm880_vm0, %v5659_v36  ;;  %v1799_v36 = vand.u32 %v4759_v31, %v5905_v15 }
  0x7b   : > { %5252 = vmatprep.mubr.msk.bf16.mxu0 %vm880_vm0, %v5660_v37 }
  0x82   : > { %5253 = vmatmul.mubr.msk.bf16.gmra.mxu0 %vm880_vm0, %v5661_v38 }
  0x83   : > { %5256 = vmatprep.mubr.msk.bf16.mxu0 %vm880_vm0, %v5662_v39 }
  0x8a   : > { %5257 = vmatmul.mubr.msk.bf16.gmra.mxu0 %vm880_vm0, %v5663_v41 }
  0x8b   : > { %5260 = vmatprep.mubr.msk.bf16.mxu0 %vm880_vm0, %v5664_v43 }
  0x92   : > { %5261 = vmatmul.mubr.msk.bf16.gmra.mxu0 %vm880_vm0, %v5665_v44 }
  0x93   : > { %5264 = vmatprep.mubr.msk.bf16.mxu0 %vm880_vm0, %v5666_v45  ;;  %v4764_v45 = vld [vmem:[%s6485_s3 + $0xc] sm:$0x3] }
  0x9a   : > { %5265 = vmatmul.mubr.msk.bf16.gmra.mxu0 %vm880_vm0, %v5667_v46 }
  0x9b   : > { %5268 = vmatprep.mubr.msk.bf16.mxu0 %vm880_vm0, %v5668_v47 }
  0xa2   : > { %5269 = vmatmul.mubr.msk.bf16.gmra.mxu0 %vm880_vm0, %v5669_v48 }
  0xa3   : > { %5272 = vmatprep.mubr.msk.bf16.mxu0 %vm880_vm0, %v5670_v49 }
  0xaa   : > { %5273 = vmatmul.mubr.msk.bf16.gmra.mxu0 %vm880_vm0, %v5671_v50  ;;  %v1889_v50 = vand.u32 %v4764_v45, %v5905_v15 }
  0xe2   : > { %v5206_v51 = vpop.f32.mrf.mxu0 }
  0xe4   : > { %v1023_v52 = vpop.f32.mrf.mxu0 }
  0xe6   : > { %v5207_v53 = vpop.f32.mrf.mxu0 }
  0xe7   : > { %v1311_v57 = vpack.c.bf16 %v5207_v53, %v5206_v51 }
  0xe8   : > { %v1026_v55 = vpop.f32.mrf.mxu0 }
  0xe9   : > { %v1310_v56 = vpack.c.bf16 %v1026_v55, %v1023_v52 }
  0xea   : > { %v5210_v58 = vpop.f32.mrf.mxu0 }
  0xeb   : > { %5288 = vmatprep.mubr.msk.bf16.mxu1 %vm1349_vm3, %v1310_v56 }
  0xec   : > { %v1039_v60 = vpop.f32.mrf.mxu0  ;;  %5289 = vmatmul.mubr.msk.bf16.vlgmr.msra.gmra.mxu1 %vm1349_vm3, %v1311_v57 }
  0xed   : > { %5297 = vmatpush3.bf16.msra.mxu1 %v1529_v42 }
  0xee   : > { %v5211_v61 = vpop.f32.mrf.mxu0  ;;  %5306 = vmatprep.subr.bf16.mxu1 %v1619_v59 }
  0xef   : > { %v1313_v0 = vpack.c.bf16 %v5211_v61, %v5210_v58 }
  0xf0   : > { %v1042_v62 = vpop.f32.mrf.mxu0 }
  0xf1   : > { %v1312_v63 = vpack.c.bf16 %v1042_v62, %v1039_v60 }
  0xf2   : > { %v5214_v1 = vpop.f32.mrf.mxu0 }
  0xf3   : > { %5292 = vmatprep.mubr.msk.bf16.mxu1 %vm1349_vm3, %v1312_v63 }
  0xf4   : > { %v1055_v2 = vpop.f32.mrf.mxu0  ;;  %5293 = vmatmul.mubr.msk.bf16.gmra.mxu1 %vm1349_vm3, %v1313_v0 }
  0xf6   : > { %v5215_v3 = vpop.f32.mrf.mxu0 }
  0xf7   : > { %v1315_v6 = vpack.c.bf16 %v5215_v3, %v5214_v1 }
  0xf8   : > { %v1058_v4 = vpop.f32.mrf.mxu0 }
  0xf9   : > { %v1314_v5 = vpack.c.bf16 %v1058_v4, %v1055_v2 }
  0xfa   : > { %v5218_v7 = vpop.f32.mrf.mxu0 }
  0xfb   : > { %5278 = vmatprep.mubr.msk.bf16.mxu0 %vm1349_vm3, %v1314_v5 }
  0xfc   : > { %v1071_v8 = vpop.f32.mrf.mxu0  ;;  %5279 = vmatmul.mubr.msk.bf16.vlgmr.msra.gmra.mxu0 %vm1349_vm3, %v1315_v6 }
  0xfe   : > { %v5219_v9 = vpop.f32.mrf.mxu0 }
  0xff   : > { %v1317_v12 = vpack.c.bf16 %v5219_v9, %v5218_v7  ;;  %v4774_v9 = vld [vmem:[%s6485_s3 + $0x10] sm:$0x3] }
 0x100   : > { %v1074_v10 = vpop.f32.mrf.mxu0 }
 0x101   : > { %v1316_v11 = vpack.c.bf16 %v1074_v10, %v1071_v8 }
 0x102   : > { %v5222_v13 = vpop.f32.mrf.mxu0 }
 0x103   : > { %5282 = vmatprep.mubr.msk.bf16.mxu0 %vm1349_vm3, %v1316_v11 }
 0x104   : > { %v1087_v14 = vpop.f32.mrf.mxu0  ;;  %5283 = vmatmul.mubr.msk.bf16.gmra.mxu0 %vm1349_vm3, %v1317_v12 }
 0x106   : > { %v5223_v16 = vpop.f32.mrf.mxu0 }
 0x107   : > { %v1319_v20 = vpack.c.bf16 %v5223_v16, %v5222_v13 }
 0x108   : > { %v1090_v18 = vpop.f32.mrf.mxu0 }
 0x109   : > { %v1318_v19 = vpack.c.bf16 %v1090_v18, %v1087_v14  ;;  %v2069_v14 = vand.u32 %v4774_v9, %v5905_v15 }
 0x10a   : > { %v5226_v21 = vpop.f32.mrf.mxu0 }
 0x10b   : > { %5298 = vmatprep.mubr.msk.bf16.mxu1 %vm1349_vm3, %v1318_v19 }
 0x10c   : > { %v1103_v23 = vpop.f32.mrf.mxu0  ;;  %5299 = vmatmul.mubr.msk.bf16.vlgmr.msra.gmra.mxu1 %vm1349_vm3, %v1319_v20 }
 0x10d   : > { %5307 = vmatpush3.bf16.msra.mxu1 %v1619_v59  ;;  %v4769_v59 = vld [vmem:[%s6485_s3 + $0xe] sm:$0x3] }
 0x10e   : > { %v5227_v24 = vpop.f32.mrf.mxu0  ;;  %5316 = vmatprep.subr.bf16.mxu1 %v1709_v22  ;;  %v1979_v0 = vand.u32 %v4769_v59, %v5905_v15 }
 0x10f   : > { %v1321_v27 = vpack.c.bf16 %v5227_v24, %v5226_v21 }
 0x110   : > { %v1106_v25 = vpop.f32.mrf.mxu0 }
 0x111   : > { %v1320_v26 = vpack.c.bf16 %v1106_v25, %v1103_v23 }
 0x112   : > { %v5230_v28 = vpop.f32.mrf.mxu0 }
 0x113   : > { %5302 = vmatprep.mubr.msk.bf16.mxu1 %vm1349_vm3, %v1320_v26 }
 0x114   : > { %v1119_v29 = vpop.f32.mrf.mxu0  ;;  %5303 = vmatmul.mubr.msk.bf16.gmra.mxu1 %vm1349_vm3, %v1321_v27 }
 0x116   : > { %v5231_v30 = vpop.f32.mrf.mxu0 }
 0x117   : > { %v1323_v34 = vpack.c.bf16 %v5231_v30, %v5230_v28 }
 0x118   : > { %v1122_v32 = vpop.f32.mrf.mxu0 }
 0x119   : > { %v1322_v33 = vpack.c.bf16 %v1122_v32, %v1119_v29 }
 0x11a   : > { %v5234_v35 = vpop.f32.mrf.mxu0 }
 0x11b   : > { %5308 = vmatprep.mubr.msk.bf16.mxu1 %vm1349_vm3, %v1322_v33 }
 0x11c   : > { %v1135_v37 = vpop.f32.mrf.mxu0  ;;  %5309 = vmatmul.mubr.msk.bf16.vlgmr.msra.gmra.mxu1 %vm1349_vm3, %v1323_v34 }
 0x11d   : > { %5317 = vmatpush3.bf16.msra.mxu1 %v1709_v22 }
 0x11e   : > { %v5235_v38 = vpop.f32.mrf.mxu0  ;;  %5326 = vmatprep.subr.bf16.mxu1 %v1799_v36 }
 0x11f   : > { %v1325_v41 = vpack.c.bf16 %v5235_v38, %v5234_v35 }
 0x120   : > { %v1138_v39 = vpop.f32.mrf.mxu0 }
 0x121   : > { %v1324_v40 = vpack.c.bf16 %v1138_v39, %v1135_v37 }
 0x122   : > { %v5238_v42 = vpop.f32.mrf.mxu0 }
 0x123   : > { %5312 = vmatprep.mubr.msk.bf16.mxu1 %vm1349_vm3, %v1324_v40 }
 0x124   : > { %v1151_v43 = vpop.f32.mrf.mxu0  ;;  %5313 = vmatmul.mubr.msk.bf16.gmra.mxu1 %vm1349_vm3, %v1325_v41 }
 0x126   : > { %v5239_v44 = vpop.f32.mrf.mxu0 }
 0x127   : > { %v1327_v48 = vpack.c.bf16 %v5239_v44, %v5238_v42 }
 0x128   : > { %v1154_v46 = vpop.f32.mrf.mxu0 }
 0x129   : > { %v1326_v47 = vpack.c.bf16 %v1154_v46, %v1151_v43 }
 0x12a   : > { %v5242_v49 = vpop.f32.mrf.mxu0 }
 0x12b   : > { %5318 = vmatprep.mubr.msk.bf16.mxu1 %vm1349_vm3, %v1326_v47 }
 0x12c   : > { %v1167_v51 = vpop.f32.mrf.mxu0  ;;  %5319 = vmatmul.mubr.msk.bf16.vlgmr.msra.gmra.mxu1 %vm1349_vm3, %v1327_v48 }
 0x12d   : > { %5327 = vmatpush3.bf16.msra.mxu1 %v1799_v36 }
 0x12e   : > { %v5243_v52 = vpop.f32.mrf.mxu0  ;;  %5336 = vmatprep.subr.bf16.mxu1 %v1889_v50 }
 0x12f   : > { %v1329_v55 = vpack.c.bf16 %v5243_v52, %v5242_v49 }
 0x130   : > { %v1170_v53 = vpop.f32.mrf.mxu0 }
 0x131   : > { %v1328_v54 = vpack.c.bf16 %v1170_v53, %v1167_v51 }
 0x132   : > { %v5246_v56 = vpop.f32.mrf.mxu0 }
 0x133   : > { %5322 = vmatprep.mubr.msk.bf16.mxu1 %vm1349_vm3, %v1328_v54 }
 0x134   : > { %v1183_v57 = vpop.f32.mrf.mxu0  ;;  %5323 = vmatmul.mubr.msk.bf16.gmra.mxu1 %vm1349_vm3, %v1329_v55  ;;  %v5672_v55 = vld [vmem:[%s6487_s5] sm:$0xff]  }
 0x136   : > { %v5247_v58 = vpop.f32.mrf.mxu0 }
 0x137   : > { %v1331_v62 = vpack.c.bf16 %v5247_v58, %v5246_v56 }
 0x138   : > { %v1186_v60 = vpop.f32.mrf.mxu0 }
 0x139   : > { %v1330_v61 = vpack.c.bf16 %v1186_v60, %v1183_v57 }
 0x13a   : > { %v5250_v63 = vpop.f32.mrf.mxu0 }
 0x13b   : > { %5328 = vmatprep.mubr.msk.bf16.mxu1 %vm1349_vm3, %v1330_v61 }
 0x13c   : > { %v1199_v1 = vpop.f32.mrf.mxu0  ;;  %5329 = vmatmul.mubr.msk.bf16.vlgmr.msra.gmra.mxu1 %vm1349_vm3, %v1331_v62 }
 0x13d   : > { %5337 = vmatpush3.bf16.msra.mxu1 %v1889_v50 }
 0x13e   : > { %v5251_v2 = vpop.f32.mrf.mxu0  ;;  %5346 = vmatprep.subr.bf16.mxu1 %v1979_v0 }
 0x13f   : > { %v1333_v5 = vpack.c.bf16 %v5251_v2, %v5250_v63 }
 0x140   : > { %v1202_v3 = vpop.f32.mrf.mxu0 }
 0x141   : > { %v1332_v4 = vpack.c.bf16 %v1202_v3, %v1199_v1 }
 0x142   : > { %v5254_v6 = vpop.f32.mrf.mxu0 }
 0x143   : > { %5332 = vmatprep.mubr.msk.bf16.mxu1 %vm1349_vm3, %v1332_v4 }
 0x144   : > { %v1215_v7 = vpop.f32.mrf.mxu0  ;;  %5333 = vmatmul.mubr.msk.bf16.gmra.mxu1 %vm1349_vm3, %v1333_v5 }
 0x146   : > { %v5255_v8 = vpop.f32.mrf.mxu0 }
 0x147   : > { %v1335_v12 = vpack.c.bf16 %v5255_v8, %v5254_v6 }
 0x148   : > { %v1218_v10 = vpop.f32.mrf.mxu0 }
 0x149   : > { %v1334_v11 = vpack.c.bf16 %v1218_v10, %v1215_v7 }
 0x14a   : > { %v5258_v13 = vpop.f32.mrf.mxu0 }
 0x14b   : > { %5338 = vmatprep.mubr.msk.bf16.mxu1 %vm1349_vm3, %v1334_v11 }
 0x14c   : > { %v1231_v16 = vpop.f32.mrf.mxu0  ;;  %5339 = vmatmul.mubr.msk.bf16.vlgmr.msra.gmra.mxu1 %vm1349_vm3, %v1335_v12 }
 0x14d   : > { %5347 = vmatpush3.bf16.msra.mxu1 %v1979_v0 }
 0x14e   : > { %v5259_v17 = vpop.f32.mrf.mxu0  ;;  %5356 = vmatprep.subr.bf16.mxu1 %v2069_v14 }
 0x14f   : > { %v1337_v20 = vpack.c.bf16 %v5259_v17, %v5258_v13 }
 0x150   : > { %v1234_v18 = vpop.f32.mrf.mxu0 }
 0x151   : > { %v1336_v19 = vpack.c.bf16 %v1234_v18, %v1231_v16 }
 0x152   : > { %v5262_v21 = vpop.f32.mrf.mxu0 }
 0x153   : > { %5342 = vmatprep.mubr.msk.bf16.mxu1 %vm1349_vm3, %v1336_v19 }
 0x154   : > { %v1247_v22 = vpop.f32.mrf.mxu0  ;;  %5343 = vmatmul.mubr.msk.bf16.gmra.mxu1 %vm1349_vm3, %v1337_v20 }
 0x156   : > { %v5263_v23 = vpop.f32.mrf.mxu0 }
 0x157   : > { %v1339_v25 = vpack.c.bf16 %v5263_v23, %v5262_v21 }
 0x158   : > { %v1250_v24 = vpop.f32.mrf.mxu0 }
 0x159   : > { %v1338_v15 = vpack.c.bf16 %v1250_v24, %v1247_v22 }
 0x15a   : > { %v5266_v26 = vpop.f32.mrf.mxu0 }
 0x15b   : > { %5348 = vmatprep.mubr.msk.bf16.mxu1 %vm1349_vm3, %v1338_v15 }
 0x15c   : > { %v1263_v27 = vpop.f32.mrf.mxu0  ;;  %5349 = vmatmul.mubr.msk.bf16.vlgmr.msra.gmra.mxu1 %vm1349_vm3, %v1339_v25 }
 0x15d   : > { %5357 = vmatpush3.bf16.msra.mxu1 %v2069_v14 }
 0x15e   : > { %v5267_v28 = vpop.f32.mrf.mxu0 }
 0x15f   : > { %v1341_v31 = vpack.c.bf16 %v5267_v28, %v5266_v26 }
 0x160   : > { %v1266_v29 = vpop.f32.mrf.mxu0 }
 0x161   : > { %v1340_v30 = vpack.c.bf16 %v1266_v29, %v1263_v27 }
 0x162   : > { %v5270_v32 = vpop.f32.mrf.mxu0 }
 0x163   : > { %5352 = vmatprep.mubr.msk.bf16.mxu1 %vm1349_vm3, %v1340_v30 }
 0x164   : > { %v1279_v33 = vpop.f32.mrf.mxu0  ;;  %5353 = vmatmul.mubr.msk.bf16.gmra.mxu1 %vm1349_vm3, %v1341_v31 }
 0x166   : > { %v5271_v34 = vpop.f32.mrf.mxu0 }
 0x167   : > { %v1343_v37 = vpack.c.bf16 %v5271_v34, %v5270_v32 }
 0x168   : > { %v1282_v35 = vpop.f32.mrf.mxu0 }
 0x169   : > { %v1342_v36 = vpack.c.bf16 %v1282_v35, %v1279_v33 }
 0x16a   : > { %v5274_v38 = vpop.f32.mrf.mxu0 }
 0x16b   : > { %5358 = vmatprep.mubr.msk.bf16.mxu1 %vm1349_vm3, %v1342_v36 }
 0x16c   : > { %v1295_v39 = vpop.f32.mrf.mxu0  ;;  %5359 = vmatmul.mubr.msk.bf16.vlgmr.msra.gmra.mxu1 %vm1349_vm3, %v1343_v37 }
 0x16e   : > { %v5275_v40 = vpop.f32.mrf.mxu0 }
 0x16f   : > { %v1345_v43 = vpack.c.bf16 %v5275_v40, %v5274_v38 }
 0x170   : > { %v1298_v41 = vpop.f32.mrf.mxu0 }
 0x171   : > { %v1344_v42 = vpack.c.bf16 %v1298_v41, %v1295_v39 }
 0x173   : > { %5362 = vmatprep.mubr.msk.bf16.mxu1 %vm1349_vm3, %v1344_v42 }
 0x174   : > { %5363 = vmatmul.mubr.msk.bf16.gmra.mxu1 %vm1349_vm3, %v1345_v43 }
 0x175   : > { %5368 = vmatprep.mubr.msk.bf16.mxu1 %vm2300_vm4, %v5672_v55 }
 0x1ac   : > { %v5290_v44 = vpop.f32.mrf.mxu1 }
 0x1ae   : > { %v1483_v45 = vpop.f32.mrf.mxu1 }
 0x1b0   : > { %v5291_v46 = vpop.f32.mrf.mxu1 }
 0x1b2   : > { %v6097_v47 = vpop.f32.mrf.mxu1 }
 0x1b4   : > { %v5294_v49 = vpop.f32.mrf.mxu1 }
 0x1b6   : > { %v1499_v51 = vpop.f32.mrf.mxu1 }
 0x1b8   : > { %v5295_v53 = vpop.f32.mrf.mxu1 }
 0x1ba   : > { %v6104_v56 = vpop.f32.mrf.mxu1 }
 0x1bc   : > { %v5280_v48 = vpop.f32.mrf.mxu0 }
 0x1bd   : > { %v1492_v57 = vadd.f32 %v5290_v44, %v5280_v48 }
 0x1be   : > { %v1403_v50 = vpop.f32.mrf.mxu0 }
 0x1bf   : > { %v1484_v60 = vadd.f32 %v1483_v45, %v1403_v50 }
 0x1c0   : > { %v5281_v52 = vpop.f32.mrf.mxu0 }
 0x1c1   : > { %v1495_v63 = vadd.f32 %v5291_v46, %v5281_v52 }
 0x1c2   : > { %v6099_v54 = vpop.f32.mrf.mxu0 }
 0x1c4   : > { %v5284_v58 = vpop.f32.mrf.mxu0 }
 0x1c5   : > { %v1508_v5 = vadd.f32 %v5294_v49, %v5284_v58 }
 0x1c6   : > { %v1419_v1 = vpop.f32.mrf.mxu0 }
 0x1c7   : > { %v1500_v8 = vadd.f32 %v1499_v51, %v1419_v1 }
 0x1c8   : > { %v5285_v6 = vpop.f32.mrf.mxu0 }
 0x1c9   : > { %v1511_v11 = vadd.f32 %v5295_v53, %v5285_v6 }
 0x1ca   : > { %v1422_v6 = vpop.f32.mrf.mxu0 }
 0x1cc   : > { %v5300_v59 = vpop.f32.mrf.mxu1 }
 0x1cd   : > { %v1598_v61 = vadd.f32 %v5300_v59, %v1492_v57 }
 0x1ce   : > { %v1565_v62 = vpop.f32.mrf.mxu1 }
 0x1cf   : > { %v1596_v0 = vadd.f32 %v1565_v62, %v1484_v60 }
 0x1d0   : > { %v5301_v2 = vpop.f32.mrf.mxu1 }
 0x1d1   : > { %v1599_v3 = vadd.f32 %v5301_v2, %v1495_v63  ;;  %v1487_v2 = vadd.f32 %v6097_v47, %v6099_v54 }
 0x1d2   : > { %v6107_v4 = vpop.f32.mrf.mxu1 }
 0x1d4   : > { %v5304_v7 = vpop.f32.mrf.mxu1 }
 0x1d5   : > { %v1602_v9 = vadd.f32 %v5304_v7, %v1508_v5  ;;  %v1597_v7 = vadd.f32 %v6107_v4, %v1487_v2 }
 0x1d6   : > { %v1581_v10 = vpop.f32.mrf.mxu1 }
 0x1d7   : > { %v1600_v12 = vadd.f32 %v1581_v10, %v1500_v8 }
 0x1d8   : > { %v5305_v13 = vpop.f32.mrf.mxu1 }
 0x1d9   : > { %v1603_v14 = vadd.f32 %v5305_v13, %v1511_v11 }
 0x1da   : > { %v6109_v16 = vpop.f32.mrf.mxu1 }
 0x1dc   : > { %v5310_v17 = vpop.f32.mrf.mxu1 }
 0x1dd   : > { %v1688_v18 = vadd.f32 %v5310_v17, %v1598_v61 }
 0x1de   : > { %v1655_v19 = vpop.f32.mrf.mxu1 }
 0x1df   : > { %v1686_v20 = vadd.f32 %v1655_v19, %v1596_v0 }
 0x1e0   : > { %v5311_v21 = vpop.f32.mrf.mxu1 }
 0x1e1   : > { %v1689_v22 = vadd.f32 %v5311_v21, %v1599_v3 }
 0x1e2   : > { %v1658_v23 = vpop.f32.mrf.mxu1 }
 0x1e3   : > { %v1687_v11 = vadd.f32 %v1658_v23, %v1597_v7 }
 0x1e4   : > { %v5314_v24 = vpop.f32.mrf.mxu1 }
 0x1e5   : > { %v1692_v15 = vadd.f32 %v5314_v24, %v1602_v9 }
 0x1e6   : > { %v1671_v25 = vpop.f32.mrf.mxu1 }
 0x1e7   : > { %v1690_v26 = vadd.f32 %v1671_v25, %v1600_v12 }
 0x1e8   : > { %v5315_v27 = vpop.f32.mrf.mxu1 }
 0x1e9   : > { %v1693_v28 = vadd.f32 %v5315_v27, %v1603_v14  ;;  %v1503_v14 = vadd.f32 %v6104_v56, %v1422_v6 }
 0x1ea   : > { %v1674_v29 = vpop.f32.mrf.mxu1 }
 0x1eb   : > { %v1601_v21 = vadd.f32 %v6109_v16, %v1503_v14 }
 0x1ec   : > { %v5320_v30 = vpop.f32.mrf.mxu1 }
 0x1ed   : > { %v1778_v31 = vadd.f32 %v5320_v30, %v1688_v18  ;;  %v4779_v18 = vld [vmem:[%s6486_s4] ss:$0 sm:$0xff]  ;;  %v1691_v30 = vadd.f32 %v1674_v29, %v1601_v21  ;;  %v5677_v21 = vld [vmem:[%s6487_s5 + $0x28] sm:$0xff]  }
 0x1ee   : > { %v1745_v32 = vpop.f32.mrf.mxu1 }
 0x1ef   : > { %v1776_v33 = vadd.f32 %v1745_v32, %v1686_v20 }
 0x1f0   : > { %v5321_v34 = vpop.f32.mrf.mxu1 }
 0x1f1   : > { %v1779_v35 = vadd.f32 %v5321_v34, %v1689_v22 }
 0x1f2   : > { %v1748_v36 = vpop.f32.mrf.mxu1 }
 0x1f3   : > { %v1777_v19 = vadd.f32 %v1748_v36, %v1687_v11 }
 0x1f4   : > { %v5324_v37 = vpop.f32.mrf.mxu1 }
 0x1f5   : > { %v1782_v47 = vadd.f32 %v5324_v37, %v1692_v15 }
 0x1f6   : > { %v1761_v38 = vpop.f32.mrf.mxu1 }
 0x1f7   : > { %v1780_v4 = vadd.f32 %v1761_v38, %v1690_v26 }
 0x1f8   : > { %v5325_v39 = vpop.f32.mrf.mxu1 }
 0x1fa   : > { %v1764_v40 = vpop.f32.mrf.mxu1 }
 0x1fb   : > { %v1781_v36 = vadd.f32 %v1764_v40, %v1691_v30  ;;  %v5684_v30 = vld [vmem:[%s6487_s5 + $0x60] sm:$0xff]  }
 0x1fc   : > { %v5330_v41 = vpop.f32.mrf.mxu1 }
 0x1fd   : > { %v1868_v3 = vadd.f32 %v5330_v41, %v1778_v31  ;;  %v1783_v31 = vadd.f32 %v5325_v39, %v1693_v28 }
 0x1fe   : > { %v1835_v42 = vpop.f32.mrf.mxu1 }
 0x1ff   : > { %v1866_v8 = vadd.f32 %v1835_v42, %v1776_v33 }
 0x200   : > { %v5331_v43 = vpop.f32.mrf.mxu1 }
 0x201   : > { %v1869_v56 = vadd.f32 %v5331_v43, %v1779_v35 }
 0x202   : > { %v1838_v44 = vpop.f32.mrf.mxu1 }
 0x203   : > { %v1867_v24 = vadd.f32 %v1838_v44, %v1777_v19 }
 0x204   : > { %v5334_v45 = vpop.f32.mrf.mxu1 }
 0x205   : > { %v1872_v25 = vadd.f32 %v5334_v45, %v1782_v47  ;;  %v5673_v47 = vld [vmem:[%s6487_s5 + $0x8] sm:$0xff]  }
 0x206   : > { %v1851_v46 = vpop.f32.mrf.mxu1 }
 0x207   : > { %v1870_v32 = vadd.f32 %v1851_v46, %v1780_v4  ;;  %v5678_v4 = vld [vmem:[%s6487_s5 + $0x30] sm:$0xff]  }
 0x208   : > { %v5335_v48 = vpop.f32.mrf.mxu1 }
 0x209   : > { %v1873_v15 = vadd.f32 %v5335_v48, %v1783_v31  ;;  %v5685_v31 = vld [vmem:[%s6487_s5 + $0x68] sm:$0xff]  }
 0x20a   : > { %v1854_v49 = vpop.f32.mrf.mxu1 }
 0x20b   : > { %v1871_v45 = vadd.f32 %v1854_v49, %v1781_v36  ;;  %v5692_v36 = vld [vmem:[%s6488_s6] sm:$0xff]  }
 0x20c   : > { %v5340_v50 = vpop.f32.mrf.mxu1 }
 0x20d   : > { %v1958_v9 = vadd.f32 %v5340_v50, %v1868_v3 }
 0x20e   : > { %v1925_v51 = vpop.f32.mrf.mxu1 }
 0x20f   : > { %v1956_v12 = vadd.f32 %v1925_v51, %v1866_v8 }
 0x210   : > { %v5341_v52 = vpop.f32.mrf.mxu1 }
 0x211   : > { %v1959_v37 = vadd.f32 %v5341_v52, %v1869_v56  ;;  %v5686_v56 = vld [vmem:[%s6487_s5 + $0x70] sm:$0xff]  }
 0x212   : > { %v1928_v53 = vpop.f32.mrf.mxu1 }
 0x213   : > { %v1957_v34 = vadd.f32 %v1928_v53, %v1867_v24  ;;  %v5680_v24 = vld [vmem:[%s6487_s5 + $0x40] sm:$0xff]  }
 0x214   : > { %v5344_v55 = vpop.f32.mrf.mxu1 }
 0x215   : > { %v1962_v41 = vadd.f32 %v5344_v55, %v1872_v25  ;;  %v5681_v25 = vld [vmem:[%s6487_s5 + $0x48] sm:$0xff]  }
 0x216   : > { %v1941_v57 = vpop.f32.mrf.mxu1 }
 0x217   : > { %v1960_v50 = vadd.f32 %v1941_v57, %v1870_v32  ;;  %v5687_v32 = vld [vmem:[%s6487_s5 + $0x78] sm:$0xff]  }
 0x218   : > { %v5345_v58 = vpop.f32.mrf.mxu1 }
 0x21a   : > { %v1944_v59 = vpop.f32.mrf.mxu1 }
 0x21b   : > { %v1961_v55 = vadd.f32 %v1944_v59, %v1871_v45 }
 0x21c   : > { %v5350_v60 = vpop.f32.mrf.mxu1 }
 0x21d   : > { %v2048_v13 = vadd.f32 %v5350_v60, %v1958_v9  ;;  %v1963_v60 = vadd.f32 %v5345_v58, %v1873_v15 }
 0x21e   : > { %v2015_v61 = vpop.f32.mrf.mxu1 }
 0x21f   : > { %v2046_v54 = vadd.f32 %v2015_v61, %v1956_v12 }
 0x220   : > { %v5351_v62 = vpop.f32.mrf.mxu1 }
 0x221   : > { %v2049_v61 = vadd.f32 %v5351_v62, %v1959_v37 }
 0x222   : > { %v2018_v63 = vpop.f32.mrf.mxu1 }
 0x223   : > { %v2047_v16 = vadd.f32 %v2018_v63, %v1957_v34  ;;  %v5689_v34 = vld [vmem:[%s6487_s5 + $0x88] sm:$0xff]  }
 0x224   : > { %v5354_v0 = vpop.f32.mrf.mxu1 }
 0x225   : > { %v2052_v26 = vadd.f32 %v5354_v0, %v1962_v41  ;;  %v5690_v41 = vld [vmem:[%s6488_s6 + $0x8] sm:$0xff]  }
 0x226   : > { %v2031_v1 = vpop.f32.mrf.mxu1  ;;  %5404 = vmatprep.subr.bf16.mxu0 %v5690_v41 }
 0x227   : > { %v2050_v28 = vadd.f32 %v2031_v1, %v1960_v50  ;;  %5405 = vmatpush3.bf16.msra.mxu0 %v5690_v41 }
 0x228   : > { %v5355_v5 = vpop.f32.mrf.mxu1  ;;  %5410 = vmatprep.subr.bf16.mxu0 %v5692_v36 }
 0x229   : > { %v2053_v40 = vadd.f32 %v5355_v5, %v1963_v60 }
 0x22a   : > { %v2034_v10 = vpop.f32.mrf.mxu1 }
 0x22b   : > { %v2051_v2 = vadd.f32 %v2034_v10, %v1961_v55  ;;  %v5694_v55 = vld [vmem:[%s6488_s6 + $0x18] sm:$0xff]  }
 0x22c   : > { %v5360_v17 = vpop.f32.mrf.mxu1 }
 0x22d   : > { %v2138_v20 = vadd.f32 %v5360_v17, %v2048_v13 }
 0x22e   : > { %v2105_v22 = vpop.f32.mrf.mxu1 }
 0x22f   : > { %v2153_v23 = vadd.f32 %v4779_v18, %v2138_v20  ;;  %v2136_v27 = vadd.f32 %v2105_v22, %v2046_v54  ;;  %v5674_v54 = vld [vmem:[%s6487_s5 + $0x10] sm:$0xff]   ;;  %v5676_v20 = vld [vmem:[%s6487_s5 + $0x20] sm:$0xff]   ;;  %v5679_v22 = vld [vmem:[%s6487_s5 + $0x38] sm:$0xff]  }
 0x230   : > { %v5361_v33 = vpop.f32.mrf.mxu1 }
 0x231   : > { %v2151_v42 = vadd.f32 %v4779_v18, %v2136_v27  ;;  %v2161_v38 = vmax.f32 %v2153_v23, 0.0  ;;  %v2139_v46 = vadd.f32 %v5361_v33, %v2049_v61  ;;  %v5682_v23 = vld [vmem:[%s6487_s5 + $0x50] sm:$0xff]   ;;  %v5683_v27 = vld [vmem:[%s6487_s5 + $0x58] sm:$0xff]   ;;  %v5688_v33 = vld [vmem:[%s6487_s5 + $0x80] sm:$0xff]  }
 0x232   : > { %v2108_v51 = vpop.f32.mrf.mxu1 }
 0x233   : > { %v2159_v44 = vmax.f32 %v2151_v42, 0.0  ;;  %v2137_v39 = vadd.f32 %v2108_v51, %v2047_v16  ;;  %v2154_v6 = vadd.f32 %v4779_v18, %v2139_v46  ;;  %v5691_v42 = vld [vmem:[%s6488_s6 + $0x40] sm:$0xff]  }
 0x234   : > { %v5364_v29 = vpop.f32.mrf.mxu1 }
 0x235   : > { %v2167_v35 = vmax.f32 %v2159_v44, %v2161_v38  ;;  %v2142_v43 = vadd.f32 %v5364_v29, %v2052_v26  ;;  %v2152_v63 = vadd.f32 %v4779_v18, %v2137_v39  ;;  %v2162_v12 = vmax.f32 %v2154_v6, 0.0  ;;  %v5693_v29 = vld [vmem:[%s6488_s6 + $0x10] sm:$0xff]  }
 0x236   : > { %v2121_v53 = vpop.f32.mrf.mxu1 }
 0x237   : > { %v2157_v48 = vadd.f32 %v4779_v18, %v2142_v43  ;;  %v2140_v52 = vadd.f32 %v2121_v53, %v2050_v28  ;;  %v2160_v8 = vmax.f32 %v2152_v63, 0.0 }
 0x238   : > { %v5365_v57 = vpop.f32.mrf.mxu1 }
 0x239   : > { %v2155_v0 = vadd.f32 %v4779_v18, %v2140_v52  ;;  %v2143_v3 = vadd.f32 %v5365_v57, %v2053_v40  ;;  %v2165_v58 = vmax.f32 %v2157_v48, 0.0  ;;  %v2168_v14 = vmax.f32 %v2160_v8, %v2162_v12 }
 0x23a   : > { %v2124_v49 = vpop.f32.mrf.mxu1 }
 0x23b   : > { %v2163_v62 = vmax.f32 %v2155_v0, 0.0  ;;  %v2158_v7 = vadd.f32 %v4779_v18, %v2143_v3  ;;  %v2141_v1 = vadd.f32 %v2124_v49, %v2051_v2  ;;  %v5695_v0 = vld [vmem:[%s6488_s6 + $0x20] sm:$0xff]  }
 0x23d   : > { %v2169_v9 = vmax.f32 %v2163_v62, %v2165_v58  ;;  %v2156_v11 = vadd.f32 %v4779_v18, %v2141_v1  ;;  %v2166_v13 = vmax.f32 %v2158_v7, 0.0  ;;  %v5675_v18 = vld [vmem:[%s6487_s5 + $0x18] sm:$0xff]   ;;  %v5696_v1 = vld [vmem:[%s6488_s6 + $0x28] sm:$0xff]  }
 0x23f   : > { %v2164_v59 = vmax.f32 %v2156_v11, 0.0  ;;  %v2171_v5 = vmax.f32 %v2167_v35, %v2169_v9 }
 0x241   : > { %v2170_v17 = vmax.f32 %v2164_v59, %v2166_v13 }
 0x243   : > { %v2172_v19 = vmax.f32 %v2168_v14, %v2170_v17 }
 0x245   : > { %v2173_v10 = vpack.c.bf16 %v2172_v19, %v2171_v5  ;;  %v5697_v5 = vld [vmem:[%s6488_s6 + $0x30] sm:$0xff]  }
 0x247   : > { %5366 = vmatprep.subr.bf16.mxu1 %v2173_v10 }
 0x248   : > { %5367 = vmatpush3.bf16.msra.mxu1 %v2173_v10 }
 0x249   : > { %5452 = vmatprep.subr.bf16.mxu1 %v5691_v42 }
 0x24b   : > { %5369 = vmatmul.mubr.msk.bf16.vlgmr.msra.gmra.mxu1 %vm2300_vm4, %v5673_v47 }
 0x24c   : > { %5372 = vmatprep.mubr.msk.bf16.mxu1 %vm2300_vm4, %v5674_v54  ;;  %5453 = vmatpush3.bf16.msra.mxu1 %v5691_v42 }
 0x253   : > { %5373 = vmatmul.mubr.msk.bf16.gmra.mxu1 %vm2300_vm4, %v5675_v18  ;;  %v5698_v18 = vld [vmem:[%s6488_s6 + $0x38] sm:$0xff]  }
 0x254   : > { %5376 = vmatprep.mubr.msk.bf16.mxu1 %vm2300_vm4, %v5676_v20 }
 0x25b   : > { %5377 = vmatmul.mubr.msk.bf16.gmra.mxu1 %vm2300_vm4, %v5677_v21 }
 0x25c   : > { %5380 = vmatprep.mubr.msk.bf16.mxu1 %vm2300_vm4, %v5678_v4 }
 0x263   : > { %5381 = vmatmul.mubr.msk.bf16.gmra.mxu1 %vm2300_vm4, %v5679_v22 }
 0x264   : > { %5384 = vmatprep.mubr.msk.bf16.mxu1 %vm2300_vm4, %v5680_v24 }
 0x26b   : > { %5385 = vmatmul.mubr.msk.bf16.gmra.mxu1 %vm2300_vm4, %v5681_v25 }
 0x26c   : > { %5388 = vmatprep.mubr.msk.bf16.mxu1 %vm2300_vm4, %v5682_v23 }
 0x273   : > { %5389 = vmatmul.mubr.msk.bf16.gmra.mxu1 %vm2300_vm4, %v5683_v27 }
 0x274   : > { %5392 = vmatprep.mubr.msk.bf16.mxu1 %vm2300_vm4, %v5684_v30 }
 0x27b   : > { %5393 = vmatmul.mubr.msk.bf16.gmra.mxu1 %vm2300_vm4, %v5685_v31 }
 0x27c   : > { %5396 = vmatprep.mubr.msk.bf16.mxu1 %vm2300_vm4, %v5686_v56 }
 0x283   : > { %5397 = vmatmul.mubr.msk.bf16.gmra.mxu1 %vm2300_vm4, %v5687_v32 }
 0x284   : > { %5400 = vmatprep.mubr.msk.bf16.mxu1 %vm2300_vm4, %v5688_v33 }
 0x28b   : > { %5401 = vmatmul.mubr.msk.bf16.gmra.mxu1 %vm2300_vm4, %v5689_v34  ;;  %v5699_v34 = vld [vmem:[%s6490_s8] sm:$0xff]  }
 0x30b   : > { %v5370_v15 = vpop.f32.mrf.mxu1 }
 0x30d   : > { %v2389_v37 = vpop.f32.mrf.mxu1 }
 0x30f   : > { %v5371_v50 = vpop.f32.mrf.mxu1 }
 0x310   : > { %v2533_v46 = vpack.c.bf16 %v5371_v50, %v5370_v15 }
 0x311   : > { %v2392_v51 = vpop.f32.mrf.mxu1 }
 0x312   : > { %v2532_v28 = vpack.c.bf16 %v2392_v51, %v2389_v37 }
 0x313   : > { %v5374_v16 = vpop.f32.mrf.mxu1 }
 0x315   : > { %v2405_v26 = vpop.f32.mrf.mxu1 }
 0x317   : > { %v5375_v38 = vpop.f32.mrf.mxu1 }
 0x318   : > { %v2535_v60 = vpack.c.bf16 %v5375_v38, %v5374_v16 }
 0x319   : > { %v2408_v44 = vpop.f32.mrf.mxu1 }
 0x31a   : > { %v2534_v45 = vpack.c.bf16 %v2408_v44, %v2405_v26 }
 0x31b   : > { %v5378_v61 = vpop.f32.mrf.mxu1 }
 0x31c   : > { %5406 = vmatprep.mubr.msk.bf16.mxu0 %vm2300_vm4, %v2534_v45 }
 0x31d   : > { %v2421_v35 = vpop.f32.mrf.mxu1  ;;  %5407 = vmatmul.mubr.msk.bf16.vlgmr.msra.gmra.mxu0 %vm2300_vm4, %v2535_v60 }
 0x31e   : > { %5412 = vmatprep.mubr.msk.bf16.mxu0 %vm2300_vm4, %v2532_v28  ;;  %5411 = vmatpush3.bf16.msra.mxu0 %v5692_v36 }
 0x31f   : > { %v5379_v39 = vpop.f32.mrf.mxu1  ;;  %5416 = vmatprep.subr.bf16.mxu0 %v5693_v29 }
 0x320   : > { %v2537_v2 = vpack.c.bf16 %v5379_v39, %v5378_v61 }
 0x321   : > { %v2424_v43 = vpop.f32.mrf.mxu1 }
 0x322   : > { %v2536_v40 = vpack.c.bf16 %v2424_v43, %v2421_v35 }
 0x323   : > { %v5382_v53 = vpop.f32.mrf.mxu1 }
 0x325   : > { %v2437_v48 = vpop.f32.mrf.mxu1  ;;  %5413 = vmatmul.mubr.msk.bf16.vlgmr.msra.gmra.mxu0 %vm2300_vm4, %v2533_v46 }
 0x326   : > { %5418 = vmatprep.mubr.msk.bf16.mxu0 %vm2300_vm4, %v2536_v40  ;;  %5417 = vmatpush3.bf16.msra.mxu0 %v5693_v29 }
 0x327   : > { %v5383_v52 = vpop.f32.mrf.mxu1  ;;  %5422 = vmatprep.subr.bf16.mxu0 %v5694_v55 }
 0x328   : > { %v2539_v62 = vpack.c.bf16 %v5383_v52, %v5382_v53 }
 0x329   : > { %v2440_v57 = vpop.f32.mrf.mxu1 }
 0x32a   : > { %v2538_v3 = vpack.c.bf16 %v2440_v57, %v2437_v48 }
 0x32b   : > { %v5386_v63 = vpop.f32.mrf.mxu1 }
 0x32d   : > { %v2453_v6 = vpop.f32.mrf.mxu1  ;;  %5419 = vmatmul.mubr.msk.bf16.vlgmr.msra.gmra.mxu0 %vm2300_vm4, %v2537_v2 }
 0x32e   : > { %5424 = vmatprep.mubr.msk.bf16.mxu0 %vm2300_vm4, %v2538_v3  ;;  %5423 = vmatpush3.bf16.msra.mxu0 %v5694_v55 }
 0x32f   : > { %v5387_v49 = vpop.f32.mrf.mxu1  ;;  %5428 = vmatprep.subr.bf16.mxu0 %v5695_v0 }
 0x330   : > { %v2541_v13 = vpack.c.bf16 %v5387_v49, %v5386_v63 }
 0x331   : > { %v2456_v58 = vpop.f32.mrf.mxu1 }
 0x332   : > { %v2540_v8 = vpack.c.bf16 %v2456_v58, %v2453_v6 }
 0x333   : > { %v5390_v7 = vpop.f32.mrf.mxu1 }
 0x335   : > { %v2469_v9 = vpop.f32.mrf.mxu1  ;;  %5425 = vmatmul.mubr.msk.bf16.vlgmr.msra.gmra.mxu0 %vm2300_vm4, %v2539_v62 }
 0x336   : > { %5430 = vmatprep.mubr.msk.bf16.mxu0 %vm2300_vm4, %v2540_v8  ;;  %5429 = vmatpush3.bf16.msra.mxu0 %v5695_v0 }
 0x337   : > { %v5391_v11 = vpop.f32.mrf.mxu1  ;;  %5434 = vmatprep.subr.bf16.mxu0 %v5696_v1 }
 0x338   : > { %v2543_v47 = vpack.c.bf16 %v5391_v11, %v5390_v7 }
 0x339   : > { %v2472_v12 = vpop.f32.mrf.mxu1 }
 0x33a   : > { %v2542_v14 = vpack.c.bf16 %v2472_v12, %v2469_v9 }
 0x33b   : > { %v5394_v59 = vpop.f32.mrf.mxu1 }
 0x33d   : > { %v2485_v17 = vpop.f32.mrf.mxu1  ;;  %5431 = vmatmul.mubr.msk.bf16.vlgmr.msra.gmra.mxu0 %vm2300_vm4, %v2541_v13 }
 0x33e   : > { %5436 = vmatprep.mubr.msk.bf16.mxu0 %vm2300_vm4, %v2542_v14  ;;  %5435 = vmatpush3.bf16.msra.mxu0 %v5696_v1 }
 0x33f   : > { %v5395_v19 = vpop.f32.mrf.mxu1  ;;  %5440 = vmatprep.subr.bf16.mxu0 %v5697_v5 }
 0x340   : > { %v2545_v24 = vpack.c.bf16 %v5395_v19, %v5394_v59 }
 0x341   : > { %v2488_v10 = vpop.f32.mrf.mxu1 }
 0x342   : > { %v2544_v20 = vpack.c.bf16 %v2488_v10, %v2485_v17 }
 0x343   : > { %v5398_v54 = vpop.f32.mrf.mxu1 }
 0x345   : > { %v2501_v21 = vpop.f32.mrf.mxu1  ;;  %5437 = vmatmul.mubr.msk.bf16.vlgmr.msra.gmra.mxu0 %vm2300_vm4, %v2543_v47 }
 0x346   : > { %5442 = vmatprep.mubr.msk.bf16.mxu0 %vm2300_vm4, %v2544_v20  ;;  %5441 = vmatpush3.bf16.msra.mxu0 %v5697_v5 }
 0x347   : > { %v5399_v4 = vpop.f32.mrf.mxu1  ;;  %5446 = vmatprep.subr.bf16.mxu0 %v5698_v18 }
 0x348   : > { %v2547_v32 = vpack.c.bf16 %v5399_v4, %v5398_v54 }
 0x349   : > { %v2504_v22 = vpop.f32.mrf.mxu1 }
 0x34a   : > { %v2546_v23 = vpack.c.bf16 %v2504_v22, %v2501_v21 }
 0x34b   : > { %v5402_v25 = vpop.f32.mrf.mxu1 }
 0x34d   : > { %v2517_v27 = vpop.f32.mrf.mxu1  ;;  %5443 = vmatmul.mubr.msk.bf16.vlgmr.msra.gmra.mxu0 %vm2300_vm4, %v2545_v24 }
 0x34e   : > { %5448 = vmatprep.mubr.msk.bf16.mxu0 %vm2300_vm4, %v2546_v23  ;;  %5447 = vmatpush3.bf16.msra.mxu0 %v5698_v18 }
 0x34f   : > { %v5403_v30 = vpop.f32.mrf.mxu1 }
 0x350   : > { %v2549_v33 = vpack.c.bf16 %v5403_v30, %v5402_v25 }
 0x351   : > { %v2520_v31 = vpop.f32.mrf.mxu1 }
 0x352   : > { %v2548_v56 = vpack.c.bf16 %v2520_v31, %v2517_v27 }
 0x354   : > { %5454 = vmatprep.mubr.msk.bf16.mxu1 %vm2300_vm4, %v2548_v56 }
 0x355   : > { %5449 = vmatmul.mubr.msk.bf16.vlgmr.msra.gmra.mxu0 %vm2300_vm4, %v2547_v32  ;;  %5455 = vmatmul.mubr.msk.bf16.vlgmr.msra.gmra.mxu1 %vm2300_vm4, %v2549_v33 }
 0x356   : > { %5460 = vmatprep.mubr.msk.bf16.mxu0 %vm3298_vm5, %v5699_v34  ;;  %v4859_v34 = vld [vmem:[%s6489_s7] ss:$0 sm:$0xff] }
 0x3dd   : > { %v5408_v41 = vpop.f32.mrf.mxu0 }
 0x3df   : > { %v2601_v42 = vpop.f32.mrf.mxu0 }
 0x3e1   : > { %v5409_v36 = vpop.f32.mrf.mxu0 }
 0x3e3   : > { %v2604_v15 = vpop.f32.mrf.mxu0 }
 0x3e5   : > { %v5414_v37 = vpop.f32.mrf.mxu0 }
 0x3e6   : > { %v2671_v48 = vadd.f32 %v5414_v37, %v5408_v41 }
 0x3e7   : > { %v2662_v50 = vpop.f32.mrf.mxu0 }
 0x3e8   : > { %v2663_v57 = vadd.f32 %v2662_v50, %v2601_v42 }
 0x3e9   : > { %v5415_v51 = vpop.f32.mrf.mxu0 }
 0x3ea   : > { %v2674_v0 = vadd.f32 %v5415_v51, %v5409_v36 }
 0x3eb   : > { %v2665_v16 = vpop.f32.mrf.mxu0 }
 0x3ec   : > { %v2666_v58 = vadd.f32 %v2665_v16, %v2604_v15 }
 0x3ed   : > { %v5420_v26 = vpop.f32.mrf.mxu0 }
 0x3ee   : > { %v2743_v2 = vadd.f32 %v5420_v26, %v2671_v48  ;;  %v5705_v48 = vld [vmem:[%s6490_s8 + $0x30] sm:$0xff]  }
 0x3ef   : > { %v2726_v38 = vpop.f32.mrf.mxu0 }
 0x3f0   : > { %v2741_v3 = vadd.f32 %v2726_v38, %v2663_v57  ;;  %v5707_v57 = vld [vmem:[%s6490_s8 + $0x40] sm:$0xff]  }
 0x3f1   : > { %v5421_v44 = vpop.f32.mrf.mxu0 }
 0x3f2   : > { %v2744_v62 = vadd.f32 %v5421_v44, %v2674_v0  ;;  %v5710_v0 = vld [vmem:[%s6490_s8 + $0x58] sm:$0xff]  }
 0x3f3   : > { %v2729_v45 = vpop.f32.mrf.mxu0 }
 0x3f4   : > { %v2742_v9 = vadd.f32 %v2729_v45, %v2666_v58  ;;  %v5714_v58 = vld [vmem:[%s6490_s8 + $0x78] sm:$0xff]  }
 0x3f5   : > { %v5426_v60 = vpop.f32.mrf.mxu0 }
 0x3f6   : > { %v2811_v6 = vadd.f32 %v5426_v60, %v2743_v2  ;;  %v5708_v2 = vld [vmem:[%s6490_s8 + $0x48] sm:$0xff]  }
 0x3f7   : > { %v2794_v61 = vpop.f32.mrf.mxu0 }
 0x3f8   : > { %v2809_v7 = vadd.f32 %v2794_v61, %v2741_v3  ;;  %v5711_v3 = vld [vmem:[%s6490_s8 + $0x60] sm:$0xff]  }
 0x3f9   : > { %v5427_v29 = vpop.f32.mrf.mxu0 }
 0x3fa   : > { %v2812_v11 = vadd.f32 %v5427_v29, %v2744_v62  ;;  %v5715_v62 = vld [vmem:[%s6490_s8 + $0x80] sm:$0xff]  }
 0x3fb   : > { %v2797_v28 = vpop.f32.mrf.mxu0 }
 0x3fc   : > { %v2810_v5 = vadd.f32 %v2797_v28, %v2742_v9  ;;  %v5719_v9 = vld [vmem:[%s6491_s9 + $0x8] sm:$0xff]  }
 0x3fd   : > { %v5432_v35 = vpop.f32.mrf.mxu0 }
 0x3fe   : > { %v2879_v1 = vadd.f32 %v5432_v35, %v2811_v6  ;;  %v5712_v6 = vld [vmem:[%s6490_s8 + $0x68] sm:$0xff]  }
 0x3ff   : > { %v2862_v39 = vpop.f32.mrf.mxu0 }
 0x400   : > { %v2877_v12 = vadd.f32 %v2862_v39, %v2809_v7  ;;  %v5716_v7 = vld [vmem:[%s6490_s8 + $0x88] sm:$0xff]  }
 0x401   : > { %v5433_v43 = vpop.f32.mrf.mxu0 }
 0x402   : > { %v2880_v14 = vadd.f32 %v5433_v43, %v2812_v11  ;;  %v5700_v43 = vld [vmem:[%s6490_s8 + $0x8] sm:$0xff]   ;;  %v5760_v11 = vmov 0.0  }
 0x403   : > { %v2865_v46 = vpop.f32.mrf.mxu0 }
 0x404   : > { %v2878_v54 = vadd.f32 %v2865_v46, %v2810_v5  ;;  %v5701_v46 = vld [vmem:[%s6490_s8 + $0x10] sm:$0xff]   ;;  %v5762_v5 = vmov 0  }
 0x405   : > { %v5438_v53 = vpop.f32.mrf.mxu0  ;;  %5631 = vset.pattern.permute.xlu0 %v5762_v5 }
 0x406   : > { %v2947_v13 = vadd.f32 %v5438_v53, %v2879_v1  ;;  %v5702_v53 = vld [vmem:[%s6490_s8 + $0x18] sm:$0xff]  }
 0x407   : > { %v2930_v55 = vpop.f32.mrf.mxu0  ;;  %v5717_v1 = vld [vmem:[%s6491_s9 + $0x18] sm:$0xff]  }
 0x408   : > { %v2945_v17 = vadd.f32 %v2930_v55, %v2877_v12  ;;  %v5703_v55 = vld [vmem:[%s6490_s8 + $0x20] sm:$0xff]   ;;  %5496 = vmatprep.subr.bf16.mxu1 %v5717_v1 }
 0x409   : > { %v5439_v40 = vpop.f32.mrf.mxu0  ;;  %5497 = vmatpush3.bf16.msra.mxu1 %v5717_v1  ;;  %v4247_v12 = vld [vmem:[%s590_s21] sm:$0x3] }
 0x40a   : > { %v2948_v18 = vadd.f32 %v5439_v40, %v2880_v14  ;;  %v5704_v40 = vld [vmem:[%s6490_s8 + $0x28] sm:$0xff]   ;;  %v4248_v14 = vld [vmem:[#allocation2] sm:$0x1] }
 0x40b   : > { %v2933_v52 = vpop.f32.mrf.mxu0  ;;  %4251 = vperm.xlu0 %5631, %v4248_v14   ;;  %v5733_v14 = vld [vmem:[%s6491_s9 + $0x88] sm:$0xff]  }
 0x40c   : > { %v2946_v24 = vadd.f32 %v2933_v52, %v2878_v54  ;;  %v5706_v52 = vld [vmem:[%s6490_s8 + $0x38] sm:$0xff]  }
 0x40d   : > { %v5444_v63 = vpop.f32.mrf.mxu0 }
 0x40e   : > { %v3015_v19 = vadd.f32 %v5444_v63, %v2947_v13  ;;  %v5709_v63 = vld [vmem:[%s6490_s8 + $0x50] sm:$0xff]   ;;  %v4263_v13 = vsel %vm1363_vm2, %v4247_v12, 0 }
 0x40f   : > { %v2998_v49 = vpop.f32.mrf.mxu0 }
 0x410   : > { %v3013_v20 = vadd.f32 %v2998_v49, %v2945_v17  ;;  %v5713_v49 = vld [vmem:[%s6490_s8 + $0x70] sm:$0xff]  }
 0x411   : > { %v5445_v8 = vpop.f32.mrf.mxu0 }
 0x412   : > { %v3016_v25 = vadd.f32 %v5445_v8, %v2948_v18  ;;  %v5718_v8 = vld [vmem:[%s6491_s9 + $0x10] sm:$0xff]  }
 0x413   : > { %v3001_v59 = vpop.f32.mrf.mxu0  ;;  %5498 = vmatprep.subr.bf16.mxu1 %v5718_v8 }
 0x414   : > { %v3014_v31 = vadd.f32 %v3001_v59, %v2946_v24  ;;  %5499 = vmatpush3.bf16.msra.mxu1 %v5718_v8  ;;  %v4246_v59 = vld [vmem:[%s6493_s11] sm:$0x1] }
 0x415   : > { %v5450_v10 = vpop.f32.mrf.mxu0  ;;  %v5456_v47 = vpop.f32.mrf.mxu1  ;;  %5504 = vmatprep.subr.bf16.mxu1 %v5719_v9  ;;  %v5720_v24 = vld [vmem:[%s6491_s9] sm:$0xff]  }
 0x416   : > { %v3083_v21 = vadd.f32 %v5450_v10, %v3015_v19 }
 0x417   : > { %v3066_v4 = vpop.f32.mrf.mxu0  ;;  %v3134_v22 = vpop.f32.mrf.mxu1 }
 0x418   : > { %v3081_v23 = vadd.f32 %v3066_v4, %v3013_v20  ;;  %v3151_v56 = vadd.f32 %v5456_v47, %v3083_v21 }
 0x419   : > { %v5451_v27 = vpop.f32.mrf.mxu0  ;;  %v5457_v30 = vpop.f32.mrf.mxu1 }
 0x41a   : > { %v3149_v32 = vadd.f32 %v3134_v22, %v3081_v23  ;;  %v3084_v33 = vadd.f32 %v5451_v27, %v3016_v25  ;;  %v3162_v37 = vadd.f32 %v4859_v34, %v3151_v56 }
 0x41b   : > { %v3069_v41 = vpop.f32.mrf.mxu0  ;;  %v3137_v15 = vpop.f32.mrf.mxu1 }
 0x41c   : > { %v3152_v42 = vadd.f32 %v5457_v30, %v3084_v33  ;;  %v3082_v36 = vadd.f32 %v3069_v41, %v3014_v31  ;;  %v3160_v50 = vadd.f32 %v4859_v34, %v3149_v32  ;;  %v3166_v44 = vmax.f32 %v3162_v37, 0.0  ;;  %v5721_v30 = vld [vmem:[%s6491_s9 + $0x28] sm:$0xff]  }
 0x41e   : > { %v3163_v51 = vadd.f32 %v4859_v34, %v3152_v42  ;;  %v3150_v16 = vadd.f32 %v3137_v15, %v3082_v36  ;;  %v3164_v45 = vmax.f32 %v3160_v50, 0.0  ;;  %v5723_v36 = vld [vmem:[%s6491_s9 + $0x38] sm:$0xff]  }
 0x420   : > { %v3167_v26 = vmax.f32 %v3163_v51, 0.0  ;;  %v3161_v38 = vadd.f32 %v4859_v34, %v3150_v16  ;;  %v5722_v34 = vld [vmem:[%s6491_s9 + $0x20] sm:$0xff]   ;;  %v5724_v16 = vld [vmem:[%s6491_s9 + $0x30] sm:$0xff]  }
 0x422   : > { %v3165_v60 = vmax.f32 %v3161_v38, 0.0  ;;  %v3169_v61 = vmax.f32 %v3166_v44, %v3167_v26  ;;  %v5725_v44 = vld [vmem:[%s6491_s9 + $0x48] sm:$0xff]  }
 0x424   : > { %v3168_v29 = vmax.f32 %v3164_v45, %v3165_v60 }
 0x426   : > { %v3170_v28 = vmax.f32 %v3168_v29, %v3169_v61 }
 0x428   : > { %v3171_v35 = vpack.c.bf16 %v3170_v28, %v3170_v28  ;;  %v5726_v28 = vld [vmem:[%s6491_s9 + $0x40] sm:$0xff]  }
 0x42a   : > { %5618 = vmatprep.subr.msk.bf16.mxu0 %vm3353_vm6, %v3171_v35  ;;  %v3355_v39 = vsel %vm3353_vm6, %v3171_v35, 0 }
 0x42b   : > { %5459 = vmatpush3.bf16.msra.mxu0 %v3355_v39 }
 0x42c   : > { %5568 = vmatprep.subr.bf16.mxu0 %v5760_v11 }
 0x42e   : > { %5461 = vmatmul.mubr.msk.bf16.vlgmr.msra.gmra.mxu0 %vm3298_vm5, %v5700_v43  ;;  %v5727_v43 = vld [vmem:[%s6491_s9 + $0x58] sm:$0xff]  }
 0x42f   : > { %5464 = vmatprep.mubr.msk.bf16.mxu0 %vm3298_vm5, %v5701_v46  ;;  %5569 = vmatpush3.bf16.msra.mxu0 %v4263_v13  ;;  %v5732_v13 = vld [vmem:[%s6491_s9 + $0x70] sm:$0xff]  }
 0x430   : > { %5586 = vmatprep.subr.bf16.mxu0 %v5760_v11 }
 0x436   : > { %5465 = vmatmul.mubr.msk.bf16.gmra.mxu0 %vm3298_vm5, %v5702_v53 }
 0x437   : > { %5468 = vmatprep.mubr.msk.bf16.mxu0 %vm3298_vm5, %v5703_v55 }
 0x43e   : > { %5469 = vmatmul.mubr.msk.bf16.gmra.mxu0 %vm3298_vm5, %v5704_v40 }
 0x43f   : > { %5472 = vmatprep.mubr.msk.bf16.mxu0 %vm3298_vm5, %v5705_v48  ;;  %v5728_v48 = vld [vmem:[%s6491_s9 + $0x50] sm:$0xff]  }
 0x446   : > { %5473 = vmatmul.mubr.msk.bf16.gmra.mxu0 %vm3298_vm5, %v5706_v52 }
 0x447   : > { %5476 = vmatprep.mubr.msk.bf16.mxu0 %vm3298_vm5, %v5707_v57 }
 0x44e   : > { %5477 = vmatmul.mubr.msk.bf16.gmra.mxu0 %vm3298_vm5, %v5708_v2  ;;  %v5729_v2 = vld [vmem:[%s6491_s9 + $0x68] sm:$0xff]  }
 0x44f   : > { %5480 = vmatprep.mubr.msk.bf16.mxu0 %vm3298_vm5, %v5709_v63 }
 0x456   : > { %5481 = vmatmul.mubr.msk.bf16.gmra.mxu0 %vm3298_vm5, %v5710_v0 }
 0x457   : > { %5484 = vmatprep.mubr.msk.bf16.mxu0 %vm3298_vm5, %v5711_v3 }
 0x45e   : > { %5485 = vmatmul.mubr.msk.bf16.gmra.mxu0 %vm3298_vm5, %v5712_v6 }
 0x45f   : > { %5488 = vmatprep.mubr.msk.bf16.mxu0 %vm3298_vm5, %v5713_v49  ;;  %v5730_v49 = vld [vmem:[%s6491_s9 + $0x60] sm:$0xff]  }
 0x466   : > { %5489 = vmatmul.mubr.msk.bf16.gmra.mxu0 %vm3298_vm5, %v5714_v58 }
 0x467   : > { %5492 = vmatprep.mubr.msk.bf16.mxu0 %vm3298_vm5, %v5715_v62 }
 0x46e   : > { %5493 = vmatmul.mubr.msk.bf16.gmra.mxu0 %vm3298_vm5, %v5716_v7  ;;  %v5731_v7 = vld [vmem:[%s6491_s9 + $0x78] sm:$0xff]  }
 0x46f   : > { %5570 = vmatprep.mubr.msk.bf16.mxu0 %vm5761_vm8, %v5760_v11 }
 0x476   : > { %5571 = vmatmul.mubr.msk.bf16.vlgmr.msra.gmra.mxu0 %vm4258_vm7, %v4246_v59 }
 0x477   : > { %5594 = vmatprep.mubr.msk.bf16.mxu0 %vm5761_vm8, %v5760_v11 }
 0x4ee   : > { %v5462_v17 = vpop.f32.mrf.mxu0 }
 0x4f0   : > { %v3391_v19 = vpop.f32.mrf.mxu0 }
 0x4f2   : > { %v5463_v10 = vpop.f32.mrf.mxu0 }
 0x4f3   : > { %v3535_v33 = vpack.c.bf16 %v5463_v10, %v5462_v17 }
 0x4f4   : > { %v3394_v47 = vpop.f32.mrf.mxu0 }
 0x4f5   : > { %v3534_v23 = vpack.c.bf16 %v3394_v47, %v3391_v19 }
 0x4f6   : > { %v5466_v54 = vpop.f32.mrf.mxu0 }
 0x4f8   : > { %v3407_v18 = vpop.f32.mrf.mxu0 }
 0x4fa   : > { %v5467_v20 = vpop.f32.mrf.mxu0 }
 0x4fb   : > { %v3537_v22 = vpack.c.bf16 %v5467_v20, %v5466_v54  ;;  %v5734_v54 = vld [vmem:[%s6491_s9 + $0x80] sm:$0xff]   ;;  %v5735_v20 = vld [vmem:[%s6496_s14 + $0x18] sm:$0xff]  }
 0x4fc   : > { %v3410_v21 = vpop.f32.mrf.mxu0 }
 0x4fd   : > { %v3536_v4 = vpack.c.bf16 %v3410_v21, %v3407_v18  ;;  %v4254_v21 = vlaneseq }
 0x4fe   : > { %v5470_v25 = vpop.f32.mrf.mxu0 }
 0x4ff   : > { %5500 = vmatprep.mubr.msk.bf16.mxu1 %vm3573_vm9, %v3536_v4  ;;  %v5737_v4 = vld [vmem:[%s6496_s14 + $0x10] sm:$0xff]  }
 0x500   : > { %5501 = vmatmul.mubr.msk.bf16.vlgmr.msra.gmra.mxu1 %vm3573_vm9, %v3537_v22  ;;  %v3423_v27 = vpop.f32.mrf.mxu0  ;;  %v6403_v22 = vshrl.u32 %v4254_v21, 7 }
 0x501   : > { %5505 = vmatpush3.bf16.msra.mxu1 %v5719_v9  ;;  %5508 = vmatprep.mubr.msk.bf16.mxu1 %vm3573_vm9, %v3534_v23  ;;  %v4252_v23 = vpop.permute.xlu0 %4251 }
 0x502   : > { %5506 = vmatprep.subr.bf16.mxu1 %v5720_v24  ;;  %v5471_v31 = vpop.f32.mrf.mxu0 }
 0x503   : > { %v3539_v51 = vpack.c.bf16 %v5471_v31, %v5470_v25  ;;  %v5736_v25 = vld [vmem:[%s6495_s13 + $0x18] sm:$0xff]  }
 0x504   : > { %v3426_v56 = vpop.f32.mrf.mxu0  ;;  %5587 = vmatpush3.bf16.msra.mxu0 %v5736_v25 }
 0x505   : > { %5507 = vmatpush3.bf16.msra.mxu1 %v5720_v24  ;;  %v3538_v32 = vpack.c.bf16 %v3426_v56, %v3423_v27  ;;  %v4256_v24 = vsub.s32 0, %v6403_v22  ;;  %v5739_v27 = vld [vmem:[%s6496_s14 + $0x8] sm:$0xff]   ;;  %5588 = vmatprep.subr.bf16.mxu0 %v5760_v11 }
 0x506   : > { %5512 = vmatprep.subr.bf16.mxu1 %v5721_v30  ;;  %v5474_v41 = vpop.f32.mrf.mxu0 }
 0x508   : > { %5509 = vmatmul.mubr.msk.bf16.vlgmr.msra.gmra.mxu1 %vm3573_vm9, %v3535_v33  ;;  %v3439_v42 = vpop.f32.mrf.mxu0  ;;  %v5741_v33 = vld [vmem:[%s6496_s14] sm:$0xff]  }
 0x509   : > { %5513 = vmatpush3.bf16.msra.mxu1 %v5721_v30  ;;  %5516 = vmatprep.mubr.msk.bf16.mxu1 %vm3573_vm9, %v3538_v32  ;;  %v4257_v30 = vrot.slane %v4252_v23, %v4256_v24  ;;  %v5738_v32 = vld [vmem:[%s6495_s13 + $0x10] sm:$0xff]  }
 0x50a   : > { %5514 = vmatprep.subr.bf16.mxu1 %v5722_v34  ;;  %v5475_v15 = vpop.f32.mrf.mxu0  ;;  %5589 = vmatpush3.bf16.msra.mxu0 %v5738_v32 }
 0x50b   : > { %v3541_v29 = vpack.c.bf16 %v5475_v15, %v5474_v41  ;;  %5590 = vmatprep.subr.bf16.mxu0 %v5760_v11  ;;  %v5740_v15 = vld [vmem:[%s6495_s13 + $0x8] sm:$0xff]  }
 0x50c   : > { %v3442_v37 = vpop.f32.mrf.mxu0 }
 0x50d   : > { %5515 = vmatpush3.bf16.msra.mxu1 %v5722_v34  ;;  %v3540_v50 = vpack.c.bf16 %v3442_v37, %v3439_v42 }
 0x50e   : > { %5520 = vmatprep.subr.bf16.mxu1 %v5723_v36  ;;  %v5478_v26 = vpop.f32.mrf.mxu0  ;;  %5591 = vmatpush3.bf16.msra.mxu0 %v5740_v15 }
 0x50f   : > { %5592 = vmatprep.subr.bf16.mxu0 %v5760_v11 }
 0x510   : > { %5517 = vmatmul.mubr.msk.bf16.vlgmr.msra.gmra.mxu1 %vm3573_vm9, %v3539_v51  ;;  %v3455_v38 = vpop.f32.mrf.mxu0  ;;  %v5743_v51 = vld [vmem:[%s6498_s16 + $0x38] sm:$0xff]  }
 0x511   : > { %5521 = vmatpush3.bf16.msra.mxu1 %v5723_v36  ;;  %5524 = vmatprep.mubr.msk.bf16.mxu1 %vm3573_vm9, %v3540_v50  ;;  %v5742_v50 = vld [vmem:[%s6495_s13] sm:$0xff]  }
 0x512   : > { %5522 = vmatprep.subr.bf16.mxu1 %v5724_v16  ;;  %v5479_v45 = vpop.f32.mrf.mxu0  ;;  %5593 = vmatpush3.bf16.msra.mxu0 %v5742_v50 }
 0x513   : > { %v3543_v40 = vpack.c.bf16 %v5479_v45, %v5478_v26  ;;  %v5745_v26 = vld [vmem:[%s6498_s16 + $0x28] sm:$0xff]  }
 0x514   : > { %v3458_v60 = vpop.f32.mrf.mxu0 }
 0x515   : > { %5523 = vmatpush3.bf16.msra.mxu1 %v5724_v16  ;;  %v3542_v61 = vpack.c.bf16 %v3458_v60, %v3455_v38  ;;  %v5744_v16 = vld [vmem:[%s6498_s16 + $0x30] sm:$0xff]   ;;  %v5746_v38 = vld [vmem:[%s6498_s16 + $0x20] sm:$0xff]  }
 0x516   : > { %5528 = vmatprep.subr.bf16.mxu1 %v5725_v44  ;;  %v5482_v35 = vpop.f32.mrf.mxu0 }
 0x518   : > { %5525 = vmatmul.mubr.msk.bf16.vlgmr.msra.gmra.mxu1 %vm3573_vm9, %v3541_v29  ;;  %v3471_v39 = vpop.f32.mrf.mxu0 }
 0x519   : > { %5529 = vmatpush3.bf16.msra.mxu1 %v5725_v44  ;;  %5532 = vmatprep.mubr.msk.bf16.mxu1 %vm3573_vm9, %v3542_v61  ;;  %v5747_v44 = vld [vmem:[%s6498_s16 + $0x18] sm:$0xff]  }
 0x51a   : > { %5530 = vmatprep.subr.bf16.mxu1 %v5726_v28  ;;  %v5483_v46 = vpop.f32.mrf.mxu0 }
 0x51b   : > { %v3545_v6 = vpack.c.bf16 %v5483_v46, %v5482_v35 }
 0x51c   : > { %v3474_v53 = vpop.f32.mrf.mxu0 }
 0x51d   : > { %5531 = vmatpush3.bf16.msra.mxu1 %v5726_v28  ;;  %v3544_v55 = vpack.c.bf16 %v3474_v53, %v3471_v39 }
 0x51e   : > { %5536 = vmatprep.subr.bf16.mxu1 %v5727_v43  ;;  %v5486_v52 = vpop.f32.mrf.mxu0 }
 0x520   : > { %5533 = vmatmul.mubr.msk.bf16.vlgmr.msra.gmra.mxu1 %vm3573_vm9, %v3543_v40  ;;  %v3487_v57 = vpop.f32.mrf.mxu0 }
 0x521   : > { %5537 = vmatpush3.bf16.msra.mxu1 %v5727_v43  ;;  %5540 = vmatprep.mubr.msk.bf16.mxu1 %vm3573_vm9, %v3544_v55  ;;  %v5748_v43 = vld [vmem:[%s6498_s16 + $0x10] sm:$0xff]  }
 0x522   : > { %5538 = vmatprep.subr.bf16.mxu1 %v5728_v48  ;;  %v5487_v63 = vpop.f32.mrf.mxu0 }
 0x523   : > { %v3547_v12 = vpack.c.bf16 %v5487_v63, %v5486_v52 }
 0x524   : > { %v3490_v0 = vpop.f32.mrf.mxu0 }
 0x525   : > { %5539 = vmatpush3.bf16.msra.mxu1 %v5728_v48  ;;  %v3546_v3 = vpack.c.bf16 %v3490_v0, %v3487_v57 }
 0x526   : > { %5544 = vmatprep.subr.bf16.mxu1 %v5729_v2  ;;  %v5490_v58 = vpop.f32.mrf.mxu0 }
 0x528   : > { %5541 = vmatmul.mubr.msk.bf16.vlgmr.msra.gmra.mxu1 %vm3573_vm9, %v3545_v6  ;;  %v3503_v62 = vpop.f32.mrf.mxu0 }
 0x529   : > { %5545 = vmatpush3.bf16.msra.mxu1 %v5729_v2  ;;  %5548 = vmatprep.mubr.msk.bf16.mxu1 %vm3573_vm9, %v3546_v3 }
 0x52a   : > { %5546 = vmatprep.subr.bf16.mxu1 %v5730_v49  ;;  %v5491_v1 = vpop.f32.mrf.mxu0 }
 0x52b   : > { %v3549_v47 = vpack.c.bf16 %v5491_v1, %v5490_v58 }
 0x52c   : > { %v3506_v8 = vpop.f32.mrf.mxu0 }
 0x52d   : > { %5547 = vmatpush3.bf16.msra.mxu1 %v5730_v49  ;;  %v3548_v9 = vpack.c.bf16 %v3506_v8, %v3503_v62 }
 0x52e   : > { %5552 = vmatprep.subr.bf16.mxu1 %v5731_v7  ;;  %v5494_v59 = vpop.f32.mrf.mxu0 }
 0x530   : > { %5549 = vmatmul.mubr.msk.bf16.vlgmr.msra.gmra.mxu1 %vm3573_vm9, %v3547_v12  ;;  %v3519_v5 = vpop.f32.mrf.mxu0 }
 0x531   : > { %5553 = vmatpush3.bf16.msra.mxu1 %v5731_v7  ;;  %5556 = vmatprep.mubr.msk.bf16.mxu1 %vm3573_vm9, %v3548_v9 }
 0x532   : > { %5554 = vmatprep.subr.bf16.mxu1 %v5732_v13  ;;  %v5495_v17 = vpop.f32.mrf.mxu0 }
 0x533   : > { %v3551_v18 = vpack.c.bf16 %v5495_v17, %v5494_v59 }
 0x534   : > { %v3522_v19 = vpop.f32.mrf.mxu0 }
 0x535   : > { %5555 = vmatpush3.bf16.msra.mxu1 %v5732_v13  ;;  %v3550_v10 = vpack.c.bf16 %v3522_v19, %v3519_v5 }
 0x536   : > { %5560 = vmatprep.subr.bf16.mxu1 %v5733_v14  ;;  %v4299_v31 = vpop.f32.mrf.mxu0 }
 0x537   : > { %v4300_v56 = vadd.f32 %v4299_v31, %v4257_v30 }
 0x538   : > { %5557 = vmatmul.mubr.msk.bf16.vlgmr.msra.gmra.mxu1 %vm3573_vm9, %v3549_v47  ;;  %v5572_v34 = vpop.f32.mrf.mxu0 }
 0x539   : > { %5561 = vmatpush3.bf16.msra.mxu1 %v5733_v14  ;;  %5564 = vmatprep.mubr.msk.bf16.mxu1 %vm3573_vm9, %v3550_v10  ;;  %v4305_v41 = vmax.f32 %v4300_v56, 0.0 }
 0x53a   : > { %5562 = vmatprep.subr.bf16.mxu1 %v5734_v54  ;;  %v4302_v42 = vpop.f32.mrf.mxu0 }
 0x53b   : > { %v4315_v36 = vpack.c.bf16 %v4305_v41, %v4305_v41 }
 0x53c   : > { %v5573_v37 = vpop.f32.mrf.mxu0 }
 0x53d   : > { %5563 = vmatpush3.bf16.msra.mxu1 %v5734_v54 }
 0x53e   : > { %5574 = vmatprep.subr.bf16.mxu1 %v5760_v11 }
 0x540   : > { %5565 = vmatmul.mubr.msk.bf16.vlgmr.msra.gmra.mxu1 %vm3573_vm9, %v3551_v18 }
 0x541   : > { %5582 = vmatprep.mubr.msk.bf16.mxu1 %vm5761_vm8, %v5760_v11  ;;  %5575 = vmatpush3.bf16.msra.mxu1 %v5735_v20 }
 0x542   : > { %5576 = vmatprep.subr.bf16.mxu1 %v5760_v11 }
 0x545   : > { %5577 = vmatpush3.bf16.msra.mxu1 %v5737_v4 }
 0x546   : > { %5578 = vmatprep.subr.bf16.mxu1 %v5760_v11 }
 0x549   : > { %5579 = vmatpush3.bf16.msra.mxu1 %v5739_v27 }
 0x54a   : > { %5580 = vmatprep.subr.bf16.mxu1 %v5760_v11 }
 0x54d   : > { %5581 = vmatpush3.bf16.msra.mxu1 %v5741_v33 }
 0x54e   : > { %5598 = vmatprep.subr.bf16.mxu1 %v5760_v11 }
 0x550   : > { %5583 = vmatmul.mubr.msk.bf16.vlgmr.msra.gmra.mxu1 %vm880_vm0, %v4315_v36 }
 0x551   : > { %5614 = vmatprep.mubr.msk.bf16.mxu1 %vm5761_vm8, %v5760_v11  ;;  %5599 = vmatpush3.bf16.msra.mxu1 %v5743_v51 }
 0x552   : > { %5600 = vmatprep.subr.bf16.mxu1 %v5760_v11 }
 0x555   : > { %5601 = vmatpush3.bf16.msra.mxu1 %v5744_v16 }
 0x556   : > { %5602 = vmatprep.subr.bf16.mxu1 %v5760_v11 }
 0x559   : > { %5603 = vmatpush3.bf16.msra.mxu1 %v5745_v26 }
 0x55a   : > { %5604 = vmatprep.subr.bf16.mxu1 %v5760_v11 }
 0x55d   : > { %5605 = vmatpush3.bf16.msra.mxu1 %v5746_v38 }
 0x55e   : > { %5606 = vmatprep.subr.bf16.mxu1 %v5760_v11 }
 0x561   : > { %5607 = vmatpush3.bf16.msra.mxu1 %v5747_v44 }
 0x562   : > { %5608 = vmatprep.subr.bf16.mxu1 %v5760_v11 }
 0x565   : > { %5609 = vmatpush3.bf16.msra.mxu1 %v5748_v43 }
 0x566   : > { %5610 = vmatprep.subr.bf16.mxu1 %v5760_v11 }
 0x5c0   : > { %v5502_v45 = vpop.f32.mrf.mxu1 }
 0x5c2   : > { %v3614_v60 = vpop.f32.mrf.mxu1 }
 0x5c4   : > { %v5503_v61 = vpop.f32.mrf.mxu1 }
 0x5c6   : > { %v3617_v29 = vpop.f32.mrf.mxu1 }
 0x5c8   : > { %v5510_v28 = vpop.f32.mrf.mxu1 }
 0x5c9   : > { %v3690_v13 = vadd.f32 %v5510_v28, %v5502_v45 }
 0x5ca   : > { %v3681_v35 = vpop.f32.mrf.mxu1 }
 0x5cb   : > { %v3682_v59 = vadd.f32 %v3681_v35, %v3614_v60 }
 0x5cc   : > { %v5511_v39 = vpop.f32.mrf.mxu1 }
 0x5cd   : > { %v3693_v14 = vadd.f32 %v5511_v39, %v5503_v61 }
 0x5ce   : > { %v3684_v46 = vpop.f32.mrf.mxu1 }
 0x5cf   : > { %v3685_v47 = vadd.f32 %v3684_v46, %v3617_v29  ;;  %v4964_v29 = vld [vmem:[%s6492_s10] ss:$0 sm:$0xff] }
 0x5d0   : > { %v5518_v53 = vpop.f32.mrf.mxu1 }
 0x5d1   : > { %v3770_v17 = vadd.f32 %v5518_v53, %v3690_v13 }
 0x5d2   : > { %v3753_v55 = vpop.f32.mrf.mxu1 }
 0x5d3   : > { %v3768_v19 = vadd.f32 %v3753_v55, %v3682_v59  ;;  %v4976_v59 = vld [vmem:[%s6497_s15] ss:$0 sm:$0xff] }
 0x5d4   : > { %v5519_v40 = vpop.f32.mrf.mxu1 }
 0x5d5   : > { %v3771_v54 = vadd.f32 %v5519_v40, %v3693_v14 }
 0x5d6   : > { %v3756_v48 = vpop.f32.mrf.mxu1 }
 0x5d7   : > { %v3769_v4 = vadd.f32 %v3756_v48, %v3685_v47 }
 0x5d8   : > { %v5526_v52 = vpop.f32.mrf.mxu1 }
 0x5d9   : > { %v3846_v18 = vadd.f32 %v5526_v52, %v3770_v17 }
 0x5da   : > { %v3829_v57 = vpop.f32.mrf.mxu1 }
 0x5db   : > { %v3844_v20 = vadd.f32 %v3829_v57, %v3768_v19 }
 0x5dc   : > { %v5527_v2 = vpop.f32.mrf.mxu1 }
 0x5dd   : > { %v3847_v25 = vadd.f32 %v5527_v2, %v3771_v54  ;;  %v4977_v54 = vld [vmem:[#allocation3] ss:$0 sm:$0xff] }
 0x5de   : > { %v3832_v63 = vpop.f32.mrf.mxu1 }
 0x5df   : > { %v3845_v31 = vadd.f32 %v3832_v63, %v3769_v4 }
 0x5e0   : > { %v5534_v0 = vpop.f32.mrf.mxu1 }
 0x5e1   : > { %v3922_v23 = vadd.f32 %v5534_v0, %v3846_v18 }
 0x5e2   : > { %v3905_v3 = vpop.f32.mrf.mxu1 }
 0x5e3   : > { %v3920_v27 = vadd.f32 %v3905_v3, %v3844_v20 }
 0x5e4   : > { %v5535_v6 = vpop.f32.mrf.mxu1 }
 0x5e5   : > { %v3923_v56 = vadd.f32 %v5535_v6, %v3847_v25 }
 0x5e6   : > { %v3908_v49 = vpop.f32.mrf.mxu1 }
 0x5e7   : > { %v3921_v41 = vadd.f32 %v3908_v49, %v3845_v31 }
 0x5e8   : > { %v5542_v58 = vpop.f32.mrf.mxu1 }
 0x5e9   : > { %v3998_v32 = vadd.f32 %v5542_v58, %v3922_v23 }
 0x5ea   : > { %v3981_v62 = vpop.f32.mrf.mxu1 }
 0x5eb   : > { %v3996_v33 = vadd.f32 %v3981_v62, %v3920_v27 }
 0x5ec   : > { %v5543_v7 = vpop.f32.mrf.mxu1 }
 0x5ed   : > { %v3999_v42 = vadd.f32 %v5543_v7, %v3923_v56 }
 0x5ee   : > { %v3984_v1 = vpop.f32.mrf.mxu1 }
 0x5ef   : > { %v3997_v50 = vadd.f32 %v3984_v1, %v3921_v41 }
 0x5f0   : > { %v5550_v8 = vpop.f32.mrf.mxu1 }
 0x5f1   : > { %v4074_v36 = vadd.f32 %v5550_v8, %v3998_v32  ;;  %v5749_v8 = vld [vmem:[%s6498_s16 + $0x8] sm:$0xff]  }
 0x5f2   : > { %v4057_v9 = vpop.f32.mrf.mxu1  ;;  %5611 = vmatpush3.bf16.msra.mxu1 %v5749_v8 }
 0x5f3   : > { %v4072_v15 = vadd.f32 %v4057_v9, %v3996_v33  ;;  %5612 = vmatprep.subr.bf16.mxu1 %v5760_v11  ;;  %v5750_v9 = vld [vmem:[%s6498_s16] sm:$0xff]  }
 0x5f4   : > { %v5551_v12 = vpop.f32.mrf.mxu1 }
 0x5f5   : > { %v4075_v51 = vadd.f32 %v5551_v12, %v3999_v42 }
 0x5f6   : > { %v4060_v5 = vpop.f32.mrf.mxu1  ;;  %5613 = vmatpush3.bf16.msra.mxu1 %v5750_v9 }
 0x5f7   : > { %v4073_v44 = vadd.f32 %v4060_v5, %v3997_v50 }
 0x5f8   : > { %v5558_v10 = vpop.f32.mrf.mxu1 }
 0x5f9   : > { %v4150_v16 = vadd.f32 %v5558_v10, %v4074_v36 }
 0x5fa   : > { %v4133_v21 = vpop.f32.mrf.mxu1 }
 0x5fb   : > { %v4148_v26 = vadd.f32 %v4133_v21, %v4072_v15 }
 0x5fc   : > { %v5559_v30 = vpop.f32.mrf.mxu1 }
 0x5fd   : > { %v4151_v45 = vadd.f32 %v5559_v30, %v4075_v51 }
 0x5fe   : > { %v4136_v34 = vpop.f32.mrf.mxu1 }
 0x5ff   : > { %v4149_v35 = vadd.f32 %v4136_v34, %v4073_v44 }
 0x600   : > { %v5566_v37 = vpop.f32.mrf.mxu1 }
 0x601   : > { %v4226_v60 = vadd.f32 %v5566_v37, %v4150_v16 }
 0x602   : > { %v4209_v38 = vpop.f32.mrf.mxu1 }
 0x603   : > { %v4224_v61 = vadd.f32 %v4209_v38, %v4148_v26  ;;  %v4237_v46 = vadd.f32 %v4964_v29, %v4226_v60 }
 0x604   : > { %v5567_v28 = vpop.f32.mrf.mxu1 }
 0x605   : > { %v4227_v39 = vadd.f32 %v5567_v28, %v4151_v45  ;;  %v4235_v53 = vadd.f32 %v4964_v29, %v4224_v61  ;;  %v4241_v57 = vmax.f32 %v4237_v46, 0.0 }
 0x606   : > { %v4212_v43 = vpop.f32.mrf.mxu1 }
 0x607   : > { %v4238_v55 = vadd.f32 %v4964_v29, %v4227_v39  ;;  %v4225_v40 = vadd.f32 %v4212_v43, %v4149_v35  ;;  %v4239_v2 = vmax.f32 %v4235_v53, 0.0 }
 0x609   : > { %v4242_v48 = vmax.f32 %v4238_v55, 0.0  ;;  %v4236_v52 = vadd.f32 %v4964_v29, %v4225_v40 }
 0x60b   : > { %v4240_v63 = vmax.f32 %v4236_v52, 0.0  ;;  %v4244_v0 = vmax.f32 %v4241_v57, %v4242_v48 }
 0x60d   : > { %v4243_v3 = vmax.f32 %v4239_v2, %v4240_v63 }
 0x60f   : > { %v4245_v6 = vmax.f32 %v4243_v3, %v4244_v0 }
 0x610   : > { %v4385_v58 = vpop.f32.mrf.mxu1 }
 0x611   : > { %v4306_v49 = vpack.c.bf16 %v4245_v6, %v4245_v6  ;;  %v4394_v12 = vrot.slane %v4385_v58, %v4256_v24 }
 0x612   : > { %v5584_v62 = vpop.f32.mrf.mxu1 }
 0x613   : > { %5595 = vmatmul.mubr.msk.bf16.vlgmr.msra.gmra.mxu0 %vm880_vm0, %v4306_v49 }
 0x614   : > { %v4388_v7 = vpop.f32.mrf.mxu1 }
 0x616   : > { %v5585_v1 = vpop.f32.mrf.mxu1 }
 0x6d3   : > { %v4456_v13 = vpop.f32.mrf.mxu0 }
 0x6d4   : > { %v4457_v5 = vadd.f32 %v4456_v13, %v4394_v12 }
 0x6d5   : > { %v5596_v14 = vpop.f32.mrf.mxu0 }
 0x6d6   : > { %v4469_v17 = vadd.f32 %v4976_v59, %v4457_v5 }
 0x6d7   : > { %v4459_v19 = vpop.f32.mrf.mxu0 }
 0x6d8   : > { %v4470_v10 = vmax.f32 %v4469_v17, 0.0 }
 0x6d9   : > { %v5597_v47 = vpop.f32.mrf.mxu0 }
 0x6da   : > { %v4471_v11 = vpack.c.bf16 %v4470_v10, %v4470_v10 }
 0x6dc   : > { %5615 = vmatmul.mubr.bf16.vlgmr.msra.gmra.mxu1 %v4471_v11 }
 0x79c   : > { %v4577_v22 = vpop.f32.mrf.mxu1 }
 0x79d   : > { %v4578_v24 = vadd.f32 %v4977_v54, %v4577_v22 }
 0x79e   : > { %v5616_v18 = vpop.f32.mrf.mxu1 }
 0x79f   : > { %4584 = vst.msk [vmem:[%s594_s2] sm:$0xff] %vm4583_vm10, %v4578_v24 }
 0x7a0   : > { %v4580_v20 = vpop.f32.mrf.mxu1 }
 0x7a2   : > { %v5617_v21 = vpop.f32.mrf.mxu1 }
 0x7a3 PF: > { %s32_s0 = sadd.s32 1, %s5757_s0  }
 0x7a4   : > { %p29_p4 = scmp.ge.s32.totalorder %s32_s0, 4  }
 0x7a6   :  { %31 = sbr.rel (!%p29_p4) target bundleno = 4 (0x4), region = 149 }

</bundles_post_ra>
